<compile_context>
chip_gen: v5e
topology: v5e:2x2
jax: 0.10.0
libtpu: 0.0.40
codegen_flags: <defaults>
</compile_context>

<pallas_src>
import math

import jax
import jax.numpy as jnp
import numpy as np
from jax.experimental import pallas as pl
from jax.experimental.pallas import tpu as pltpu

# ---------------- config (small, matching the module) ----------------
D_MODEL = 32
NUM_HEADS = 4
HEAD_DIM = D_MODEL // NUM_HEADS
BATCH = 2
SEQ = 8
LN_EPS = 1e-5
OUT_PAD = 128                      # lane-dense output width (multiple of 128)
HI = jax.lax.Precision.HIGHEST


# ----------------------------- Pallas kernel -------------------------------
def attention_kernel(x_ref, g_ref, b_ref, wq_ref, wk_ref, wv_ref, wo_ref, out_ref):
    """Fused LN -> QKV -> causal multi-head attention -> output projection."""
    B, S, H, HD = BATCH, SEQ, NUM_HEADS, HEAD_DIM
    N, D = B * S, D_MODEL
    scale = 1.0 / math.sqrt(HD)

    # ---- LayerNorm over the feature dim (f32 VPU math) ----
    x = x_ref[...]                                           # (N, D)
    mu = jnp.mean(x, axis=-1, keepdims=True)
    var = jnp.mean((x - mu) ** 2, axis=-1, keepdims=True)
    xn = (x - mu) * jax.lax.rsqrt(var + LN_EPS) * g_ref[...] + b_ref[...]

    # ---- QKV projection, head-major.
    # Weights are (H, D, HD); a single broadcast of xn is reused by three
    # batched matmuls with a leading batch dim, so q/k/v are produced already
    # split per head -> no lane slicing / relayout / concatenation.
    xb = jnp.broadcast_to(xn[None], (H, N, D))               # (H, N, D)
    q = jnp.einsum('hnd,hdk->hnk', xb, wq_ref[...],
                   preferred_element_type=jnp.float32, precision=HI)
    k = jnp.einsum('hnd,hdk->hnk', xb, wk_ref[...],
                   preferred_element_type=jnp.float32, precision=HI)
    v = jnp.einsum('hnd,hdk->hnk', xb, wv_ref[...],
                   preferred_element_type=jnp.float32, precision=HI)

    # fold (head, batch) into one leading batch dim G = H*B
    G = H * B
    q = q.reshape(G, S, HD)
    k = k.reshape(G, S, HD)
    v = v.reshape(G, S, HD)

    # ---- scores + causal mask + softmax (single batched einsum, no head loop)
    s = jnp.einsum('gqd,gkd->gqk', q, k,
                   preferred_element_type=jnp.float32, precision=HI) * scale
    row = jax.lax.broadcasted_iota(jnp.int32, (S, S), 0)
    col = jax.lax.broadcasted_iota(jnp.int32, (S, S), 1)
    s = jnp.where((row >= col)[None], s, -1e30)
    m = jnp.max(s, axis=-1, keepdims=True)
    p = jnp.exp(s - m)                                       # EUP
    l = jnp.sum(p, axis=-1, keepdims=True)
    p = p * pl.reciprocal(l, approx=True)                    # EUP, not VPU divide

    ctx = jnp.einsum('gqk,gkd->gqd', p, v,
                     preferred_element_type=jnp.float32, precision=HI)  # (G,S,HD)

    # ---- output projection, folded per head then reduced over heads.
    # wo_ref is (H, HD, OUT_PAD) with OUT_PAD=128, so the final store is a
    # lane-dense (N, 128) slab of unmasked vst.
    ctx = ctx.reshape(H, N, HD)
    out_h = jnp.einsum('hnk,hko->hno', ctx, wo_ref[...],
                       preferred_element_type=jnp.float32, precision=HI)
    out_ref[...] = jnp.sum(out_h, axis=0)                    # (N, OUT_PAD)


# ------------------------------- wrapper ------------------------------------
@jax.jit
def attention_layer_forward(x, params):
    """Pallas forward of AttentionLayer.

    attention_mask: PyTorch's F.scaled_dot_product_attention rejects an
    explicit attn_mask together with is_causal=True, so the only usable value
    in the reference module is None -> the kernel implements causal masking.
    # TODO(synk): additive (non-None) attention_mask path not implemented.
    """
    B, S, D = x.shape
    H, HD = NUM_HEADS, HEAD_DIM
    N = B * S

    # ---- wrapper-side layout plumbing (plain JAX, outside the kernel) ----
    x2d = x.reshape(N, D)
    g = params['ln_g'].reshape(1, D)
    b = params['ln_b'].reshape(1, D)

    wqkv = params['wqkv']                                    # (3D, D) torch layout

    def per_head(w):                                         # (D, D) -> (H, D, HD)
        return jnp.transpose(w.reshape(H, HD, D), (0, 2, 1))

    wq = per_head(wqkv[0 * D:1 * D])
    wk = per_head(wqkv[1 * D:2 * D])
    wv = per_head(wqkv[2 * D:3 * D])

    # output-projection weight: (D_out, D_in) -> (H, HD, OUT_PAD), lane-padded
    wo = params['wo'].T.reshape(H, HD, D)
    wo = jnp.pad(wo, ((0, 0), (0, 0), (0, OUT_PAD - D)))

    flops = (3 * 2 * H * N * D * HD            # qkv projections
             + 2 * 2 * H * B * S * S * HD      # scores + context
             + 2 * H * N * HD * OUT_PAD)       # output projection
    transcendentals = H * B * S * S + H * B * S + N
    bytes_accessed = 4 * (N * D + 2 * D + 3 * H * D * HD
                          + H * HD * OUT_PAD + N * OUT_PAD)

    vmem = pl.BlockSpec(memory_space=pltpu.MemorySpace.VMEM)
    out_padded = pl.pallas_call(
        attention_kernel,
        out_shape=jax.ShapeDtypeStruct((N, OUT_PAD), jnp.float32),
        in_specs=[vmem] * 7,
        out_specs=vmem,
        cost_estimate=pl.CostEstimate(flops=flops,
                                      transcendentals=transcendentals,
                                      bytes_accessed=bytes_accessed),
    )(x2d, g, b, wq, wk, wv, wo)

    return out_padded[:, :D].reshape(B, S, D)


# --------------------------- pure-JAX reference -------------------------------
def reference_forward(x, params):
    """Mirror of the PyTorch AttentionLayer.forward (causal SDPA)."""
    B, S, D = x.shape
    H, HD = NUM_HEADS, HEAD_DIM
    mu = x.mean(-1, keepdims=True)
    var = ((x - mu) ** 2).mean(-1, keepdims=True)
    xn = (x - mu) / jnp.sqrt(var + LN_EPS) * params['ln_g'] + params['ln_b']
    qkv = jnp.einsum('bsd,ed->bse', xn, params['wqkv'], precision=HI)
    q, k, v = jnp.split(qkv, 3, axis=-1)
    q = q.reshape(B, S, H, HD).transpose(0, 2, 1, 3)
    k = k.reshape(B, S, H, HD).transpose(0, 2, 1, 3)
    v = v.reshape(B, S, H, HD).transpose(0, 2, 1, 3)
    s = jnp.einsum('bhqd,bhkd->bhqk', q, k, precision=HI) / math.sqrt(HD)
    causal = jnp.tril(jnp.ones((S, S), dtype=bool))
    s = jnp.where(causal[None, None], s, -jnp.inf)
    a = jax.nn.softmax(s, axis=-1)
    o = jnp.einsum('bhqk,bhkd->bhqd', a, v, precision=HI)
    o = o.transpose(0, 2, 1, 3).reshape(B, S, D)
    return jnp.einsum('bsd,ed->bse', o, params['wo'], precision=HI)


# ----------------------------- param init ------------------------------------
def init_params(key):
    D = D_MODEL
    k1, k2 = jax.random.split(key)
    scale = 0.1
    return {
        'ln_g': jnp.ones((D,), jnp.float32),
        'ln_b': jnp.zeros((D,), jnp.float32),
        'wqkv': (scale * jax.random.normal(k1, (3 * D, D))).astype(jnp.float32),
        'wo': (scale * jax.random.normal(k2, (D, D))).astype(jnp.float32),
    }


# --------------------------------- main ---------------------------------------
if __name__ == "__main__":
    key = jax.random.PRNGKey(0)
    kx, kp = jax.random.split(key)

    x = jax.random.normal(kx, (BATCH, SEQ, D_MODEL), dtype=jnp.float32)
    params = init_params(kp)

    out = jax.block_until_ready(attention_layer_forward(x, params))
    ref = jax.block_until_ready(reference_forward(x, params))

    # Tolerance is slightly looser than f32-exact because the kernel
    # normalizes the softmax with pl.reciprocal(approx=True) (EUP) per review.
    np.testing.assert_allclose(np.asarray(out), np.asarray(ref),
                               rtol=2e-3, atol=2e-3)
    assert out.shape == (BATCH, SEQ, D_MODEL)

    print("KERNEL_OK")
</pallas_src>

<mosaic_0001>
module attributes {stable_mosaic.version = 11 : i64} {
  func.func @attention_kernel(%arg0: memref<16x32xf32, #tpu.memory_space<vmem>>, %arg1: memref<1x32xf32, #tpu.memory_space<vmem>>, %arg2: memref<1x32xf32, #tpu.memory_space<vmem>>, %arg3: memref<4x32x8xf32, #tpu.memory_space<vmem>>, %arg4: memref<4x32x8xf32, #tpu.memory_space<vmem>>, %arg5: memref<4x32x8xf32, #tpu.memory_space<vmem>>, %arg6: memref<4x8x128xf32, #tpu.memory_space<vmem>>, %arg7: memref<16x128xf32, #tpu.memory_space<vmem>>) attributes {dimension_semantics = [], scalar_prefetch = 0 : i64, scratch_operands = 0 : i64, tpu.core_type = #tpu.core_type<tc>} {
    %c0 = arith.constant 0 : index
    %c0_0 = arith.constant 0 : index
    %0 = vector.load %arg0[%c0, %c0_0] : memref<16x32xf32, #tpu.memory_space<vmem>>, vector<16x32xf32>
    %cst = arith.constant dense<0.000000e+00> : vector<16xf32>
    %1 = vector.multi_reduction <add>, %0, %cst [1] : vector<16x32xf32> to vector<16xf32>
    %2 = vector.shape_cast %1 : vector<16xf32> to vector<16x1xf32>
    %cst_1 = arith.constant 3.200000e+01 : f32
    %3 = vector.broadcast %cst_1 : f32 to vector<16x1xf32>
    %4 = arith.divf %2, %3 : vector<16x1xf32>
    %5 = vector.broadcast %4 : vector<16x1xf32> to vector<16x32xf32>
    %6 = arith.subf %0, %5 : vector<16x32xf32>
    %7 = arith.mulf %6, %6 : vector<16x32xf32>
    %cst_2 = arith.constant dense<0.000000e+00> : vector<16xf32>
    %8 = vector.multi_reduction <add>, %7, %cst_2 [1] : vector<16x32xf32> to vector<16xf32>
    %9 = vector.shape_cast %8 : vector<16xf32> to vector<16x1xf32>
    %cst_3 = arith.constant 3.200000e+01 : f32
    %10 = vector.broadcast %cst_3 : f32 to vector<16x1xf32>
    %11 = arith.divf %9, %10 : vector<16x1xf32>
    %12 = vector.broadcast %4 : vector<16x1xf32> to vector<16x32xf32>
    %13 = arith.subf %0, %12 : vector<16x32xf32>
    %cst_4 = arith.constant 9.99999974E-6 : f32
    %14 = vector.broadcast %cst_4 : f32 to vector<16x1xf32>
    %15 = arith.addf %11, %14 : vector<16x1xf32>
    %16 = math.rsqrt %15 : vector<16x1xf32>
    %17 = vector.broadcast %16 : vector<16x1xf32> to vector<16x32xf32>
    %18 = arith.mulf %13, %17 : vector<16x32xf32>
    %c0_5 = arith.constant 0 : index
    %c0_6 = arith.constant 0 : index
    %19 = vector.load %arg1[%c0_5, %c0_6] : memref<1x32xf32, #tpu.memory_space<vmem>>, vector<1x32xf32>
    %20 = vector.broadcast %19 : vector<1x32xf32> to vector<16x32xf32>
    %21 = arith.mulf %18, %20 : vector<16x32xf32>
    %c0_7 = arith.constant 0 : index
    %c0_8 = arith.constant 0 : index
    %22 = vector.load %arg2[%c0_7, %c0_8] : memref<1x32xf32, #tpu.memory_space<vmem>>, vector<1x32xf32>
    %23 = vector.broadcast %22 : vector<1x32xf32> to vector<16x32xf32>
    %24 = arith.addf %21, %23 : vector<16x32xf32>
    %25 = vector.shape_cast %24 : vector<16x32xf32> to vector<1x16x32xf32>
    %26 = vector.shape_cast %25 : vector<1x16x32xf32> to vector<1x16x32xf32>
    %27 = vector.broadcast %26 : vector<1x16x32xf32> to vector<4x16x32xf32>
    %c0_9 = arith.constant 0 : index
    %c0_10 = arith.constant 0 : index
    %c0_11 = arith.constant 0 : index
    %28 = vector.load %arg3[%c0_9, %c0_10, %c0_11] : memref<4x32x8xf32, #tpu.memory_space<vmem>>, vector<4x32x8xf32>
    "tpu.trace_start"() <{level = 10 : i32, message = "hnd,hdk->hnk"}> : () -> ()
    %cst_12 = arith.constant dense<0.000000e+00> : vector<4x16x8xf32>
    %29 = tpu.matmul %27, %28, %cst_12 {dimension_numbers = #tpu.dot_dimension_numbers<[2], [1], [1], [2], [0, 0, 0, 1, 1, 2], [0], [0]>, precision = #tpu.contract_precision<fp32>} : vector<4x16x32xf32>, vector<4x32x8xf32>, vector<4x16x8xf32> -> vector<4x16x8xf32>
    "tpu.trace_stop"() : () -> ()
    %c0_13 = arith.constant 0 : index
    %c0_14 = arith.constant 0 : index
    %c0_15 = arith.constant 0 : index
    %30 = vector.load %arg4[%c0_13, %c0_14, %c0_15] : memref<4x32x8xf32, #tpu.memory_space<vmem>>, vector<4x32x8xf32>
    "tpu.trace_start"() <{level = 10 : i32, message = "hnd,hdk->hnk"}> : () -> ()
    %cst_16 = arith.constant dense<0.000000e+00> : vector<4x16x8xf32>
    %31 = tpu.matmul %27, %30, %cst_16 {dimension_numbers = #tpu.dot_dimension_numbers<[2], [1], [1], [2], [0, 0, 0, 1, 1, 2], [0], [0]>, precision = #tpu.contract_precision<fp32>} : vector<4x16x32xf32>, vector<4x32x8xf32>, vector<4x16x8xf32> -> vector<4x16x8xf32>
    "tpu.trace_stop"() : () -> ()
    %c0_17 = arith.constant 0 : index
    %c0_18 = arith.constant 0 : index
    %c0_19 = arith.constant 0 : index
    %32 = vector.load %arg5[%c0_17, %c0_18, %c0_19] : memref<4x32x8xf32, #tpu.memory_space<vmem>>, vector<4x32x8xf32>
    "tpu.trace_start"() <{level = 10 : i32, message = "hnd,hdk->hnk"}> : () -> ()
    %cst_20 = arith.constant dense<0.000000e+00> : vector<4x16x8xf32>
    %33 = tpu.matmul %27, %32, %cst_20 {dimension_numbers = #tpu.dot_dimension_numbers<[2], [1], [1], [2], [0, 0, 0, 1, 1, 2], [0], [0]>, precision = #tpu.contract_precision<fp32>} : vector<4x16x32xf32>, vector<4x32x8xf32>, vector<4x16x8xf32> -> vector<4x16x8xf32>
    "tpu.trace_stop"() : () -> ()
    %34 = vector.shape_cast %29 : vector<4x16x8xf32> to vector<8x8x8xf32>
    %35 = vector.shape_cast %31 : vector<4x16x8xf32> to vector<8x8x8xf32>
    %36 = vector.shape_cast %33 : vector<4x16x8xf32> to vector<8x8x8xf32>
    "tpu.trace_start"() <{level = 10 : i32, message = "gqd,gkd->gqk"}> : () -> ()
    %cst_21 = arith.constant dense<0.000000e+00> : vector<8x8x8xf32>
    %37 = tpu.matmul %34, %35, %cst_21 {dimension_numbers = #tpu.dot_dimension_numbers<[2], [2], [1], [1], [0, 0, 0, 1, 1, 1], [0], [0]>, precision = #tpu.contract_precision<fp32>} : vector<8x8x8xf32>, vector<8x8x8xf32>, vector<8x8x8xf32> -> vector<8x8x8xf32>
    "tpu.trace_stop"() : () -> ()
    %cst_22 = arith.constant 0.353553385 : f32
    %38 = vector.broadcast %cst_22 : f32 to vector<8x8x8xf32>
    %39 = arith.mulf %37, %38 : vector<8x8x8xf32>
    %40 = tpu.iota {dimensions = array<i32: 0>} : vector<8x8xi32>
    %41 = tpu.iota {dimensions = array<i32: 1>} : vector<8x8xi32>
    %42 = arith.cmpi sge, %40, %41 : vector<8x8xi32>
    %43 = vector.shape_cast %42 : vector<8x8xi1> to vector<1x8x8xi1>
    %cst_23 = arith.constant -1.000000e+30 : f32
    %44 = vector.shape_cast %43 : vector<1x8x8xi1> to vector<1x8x8xi1>
    %45 = vector.broadcast %44 : vector<1x8x8xi1> to vector<8x8x8xi1>
    %46 = vector.broadcast %cst_23 : f32 to vector<8x8x8xf32>
    %47 = arith.select %45, %39, %46 : vector<8x8x8xi1>, vector<8x8x8xf32>
    %cst_24 = arith.constant dense<0xFF800000> : vector<8x8xf32>
    %48 = vector.multi_reduction <maximumf>, %47, %cst_24 [2] : vector<8x8x8xf32> to vector<8x8xf32>
    %49 = vector.shape_cast %48 : vector<8x8xf32> to vector<8x8x1xf32>
    %50 = vector.broadcast %49 : vector<8x8x1xf32> to vector<8x8x8xf32>
    %51 = arith.subf %47, %50 : vector<8x8x8xf32>
    %52 = math.exp %51 : vector<8x8x8xf32>
    %cst_25 = arith.constant dense<0.000000e+00> : vector<8x8xf32>
    %53 = vector.multi_reduction <add>, %52, %cst_25 [2] : vector<8x8x8xf32> to vector<8x8xf32>
    %54 = vector.shape_cast %53 : vector<8x8xf32> to vector<8x8x1xf32>
    %55 = tpu.reciprocal %54 {approx = true} : vector<8x8x1xf32> -> vector<8x8x1xf32>
    %56 = vector.broadcast %55 : vector<8x8x1xf32> to vector<8x8x8xf32>
    %57 = arith.mulf %52, %56 : vector<8x8x8xf32>
    "tpu.trace_start"() <{level = 10 : i32, message = "gqk,gkd->gqd"}> : () -> ()
    %cst_26 = arith.constant dense<0.000000e+00> : vector<8x8x8xf32>
    %58 = tpu.matmul %57, %36, %cst_26 {dimension_numbers = #tpu.dot_dimension_numbers<[2], [1], [1], [2], [0, 0, 0, 1, 1, 2], [0], [0]>, precision = #tpu.contract_precision<fp32>} : vector<8x8x8xf32>, vector<8x8x8xf32>, vector<8x8x8xf32> -> vector<8x8x8xf32>
    "tpu.trace_stop"() : () -> ()
    %59 = vector.shape_cast %58 : vector<8x8x8xf32> to vector<4x16x8xf32>
    %c0_27 = arith.constant 0 : index
    %c0_28 = arith.constant 0 : index
    %c0_29 = arith.constant 0 : index
    %60 = vector.load %arg6[%c0_27, %c0_28, %c0_29] : memref<4x8x128xf32, #tpu.memory_space<vmem>>, vector<4x8x128xf32>
    "tpu.trace_start"() <{level = 10 : i32, message = "hnk,hko->hno"}> : () -> ()
    %cst_30 = arith.constant dense<0.000000e+00> : vector<4x16x128xf32>
    %61 = tpu.matmul %59, %60, %cst_30 {dimension_numbers = #tpu.dot_dimension_numbers<[2], [1], [1], [2], [0, 0, 0, 1, 1, 2], [0], [0]>, precision = #tpu.contract_precision<fp32>} : vector<4x16x8xf32>, vector<4x8x128xf32>, vector<4x16x128xf32> -> vector<4x16x128xf32>
    "tpu.trace_stop"() : () -> ()
    %cst_31 = arith.constant dense<0.000000e+00> : vector<16x128xf32>
    %62 = vector.multi_reduction <add>, %61, %cst_31 [0] : vector<4x16x128xf32> to vector<16x128xf32>
    %c0_32 = arith.constant 0 : index
    %c0_33 = arith.constant 0 : index
    %63 = vector.load %arg7[%c0_32, %c0_33] : memref<16x128xf32, #tpu.memory_space<vmem>>, vector<16x128xf32>
    tpu.vector_store %arg7[%c0_32, %c0_33], %62 {strides = array<i32>} : memref<16x128xf32, #tpu.memory_space<vmem>>, vector<16x128xf32>,
    return
  }
}

</mosaic_0001>

<bundles_post_ra>
// kernel: attention_layer_forward.1
= control target key start
LH: loop header
LB: loop body
LE: loop exit
PB: predicated region body
PF: predicated region fallthrough
CT: control target
= control target key end

     0   :  { %vm28_vm0 = vcmask 261120   ;;  %v6047_v4 = vmov 32.0   ;;  %vm2738_vm8 = vcmask 64512   ;;  %s7626_s0 = inlined_call_operand.vmem [shape: f32[16,32], index: 0, kind: input, shape index: {}]   ;;  %s7627_s1 = inlined_call_operand.vmem [shape: f32[1,32], index: 1, kind: input, shape index: {}]   ;;  %s7628_s2 = inlined_call_operand.vmem [shape: f32[1,32], index: 2, kind: input, shape index: {}]   ;;  %s7629_s3 = inlined_call_operand.vmem [shape: f32[4,32,8], index: 3, kind: input, shape index: {}]   ;;  %s7630_s4 = inlined_call_operand.vmem [shape: f32[4,32,8], index: 4, kind: input, shape index: {}]   ;;  %s7631_s5 = inlined_call_operand.vmem [shape: f32[4,32,8], index: 5, kind: input, shape index: {}]   ;;  %s7632_s6 = inlined_call_operand.vmem [shape: f32[4,8,128], index: 6, kind: input, shape index: {}]   ;;  %s7633_s7 = inlined_call_operand.vmem [shape: f32[16,128], index: 7, kind: output, shape index: {}]  }
   0x1   :  { %v26_v0 = vld [vmem:[%s7626_s0] sm:$0xff]  ;;  %v27_v2 = vld [vmem:[%s7626_s0 + $0x8] sm:$0xff]  ;;  %6009 = vrcp.f32 %v6047_v4  ;;  %v95_v21 = vld [vmem:[%s7629_s3 + $0x18] sm:$0xff] }
   0x2   :  { %v29_v1 = vsel %vm28_vm0, %v26_v0, 0.0  ;;  %v32_v3 = vsel %vm28_vm0, %v27_v2, 0.0  ;;  %v126_v22 = vand.u32 4294901760, %v95_v21  ;;  %v94_v23 = vld [vmem:[%s7629_s3 + $0x10] sm:$0xff]  ;;  %v93_v26 = vld [vmem:[%s7629_s3 + $0x8] sm:$0xff]  ;;  %v92_v30 = vld [vmem:[%s7629_s3] sm:$0xff] }
   0x3   :  { %30 = vadd.xlane.f32.xlu0 %v29_v1  ;;  %v128_v25 = vand.u32 4294901760, %v94_v23  ;;  %v130_v29 = vand.u32 4294901760, %v93_v26  ;;  %v132_v34 = vand.u32 4294901760, %v92_v30  ;;  %v99_v47 = vld [vmem:[%s7629_s3 + $0x38] sm:$0xff]  ;;  %v98_v50 = vld [vmem:[%s7629_s3 + $0x30] sm:$0xff]  ;;  %v97_v53 = vld [vmem:[%s7629_s3 + $0x28] sm:$0xff] }
   0x4   :  { %v164_v24 = vsub.f32 %v95_v21, %v126_v22  ;;  %244 = vmatpush.msra.mxu3 %v126_v22  ;;  %127 = vmatpush.msra.mxu0 %v126_v22  ;;  %v6126_v49 = vand.u32 4294901760, %v99_v47  ;;  %v6135_v52 = vand.u32 4294901760, %v98_v50  ;;  %v6145_v56 = vand.u32 4294901760, %v97_v53  ;;  %v96_v58 = vld [vmem:[%s7629_s3 + $0x20] sm:$0xff] }
   0x5   :  { %v170_v28 = vsub.f32 %v94_v23, %v128_v25  ;;  %v176_v33 = vsub.f32 %v93_v26, %v130_v29  ;;  %v182_v38 = vsub.f32 %v92_v30, %v132_v34  ;;  %v6159_v63 = vand.u32 4294901760, %v96_v58  ;;  %v6007_v21 = vld [vmem:[%s7627_s1] ss:$0 sm:$0xff] }
   0x6   :  { %v165_v27 = vand.u32 4294901760, %v164_v24  ;;  %210 = vmatpush.msra.mxu2 %v164_v24  ;;  %246 = vmatpush.msra.mxu3 %v128_v25  ;;  %v6133_v51 = vsub.f32 %v99_v47, %v6126_v49  ;;  %v6143_v55 = vsub.f32 %v98_v50, %v6135_v52  ;;  %v6157_v62 = vsub.f32 %v97_v53, %v6145_v56 }
   0x7   :  { %v6010_v5 = vpop.eup %6009  ;;  %129 = vmatpush.msra.mxu0 %v128_v25  ;;  %v171_v32 = vand.u32 4294901760, %v170_v28  ;;  %v177_v37 = vand.u32 4294901760, %v176_v33  ;;  %v183_v41 = vand.u32 4294901760, %v182_v38 }
   0x8   :  { %v36_v6 = vmul.f32 32.0, %v6010_v5  ;;  %vm40_vm1 = vweird.f32 %v6010_v5  ;;  %v166_v31 = vsub.f32 %v164_v24, %v165_v27  ;;  %213 = vmatpush.msra.mxu2 %v170_v28  ;;  %248 = vmatpush.msra.mxu3 %v130_v29  ;;  %v381_v54 = vand.u32 4294901760, %v6133_v51  ;;  %v6008_v24 = vld [vmem:[%s7628_s2] ss:$0 sm:$0xff] }
   0x9   :  { %131 = vmatpush.msra.mxu0 %v130_v29  ;;  %v172_v36 = vsub.f32 %v170_v28, %v171_v32  ;;  %v178_v40 = vsub.f32 %v176_v33, %v177_v37  ;;  %v184_v43 = vsub.f32 %v182_v38, %v183_v41  ;;  %v387_v61 = vand.u32 4294901760, %v6143_v55 }
   0xa   :  { %v37_v7 = vsub.f32 1.0, %v36_v6  ;;  %v167_v35 = vand.u32 4294901760, %v166_v31  ;;  %216 = vmatpush.msra.mxu2 %v176_v33  ;;  %250 = vmatpush.msra.mxu3 %v132_v34  ;;  %v382_v60 = vsub.f32 %v6133_v51, %v381_v54  ;;  %v393_v4 = vand.u32 4294901760, %v6157_v62 }
   0xb   :  { %33 = vadd.xlane.f32.xlu0 %v32_v3  ;;  %133 = vmatpush.msra.mxu0 %v132_v34  ;;  %v173_v39 = vand.u32 4294901760, %v172_v36  ;;  %v179_v42 = vand.u32 4294901760, %v178_v40  ;;  %v185_v44 = vand.u32 4294901760, %v184_v43  ;;  %v388_v3 = vsub.f32 %v6143_v55, %v387_v61 }
   0xc   :  { %v38_v8 = vmul.f32 %v6010_v5, %v37_v7  ;;  %168 = vmatpush.msra.mxu1 %v167_v35  ;;  %219 = vmatpush.msra.mxu2 %v182_v38  ;;  %v6167_v6 = vsub.f32 %v96_v58, %v6159_v63 }
   0xd   :  { %279 = vmatpush.msrb.mxu0 %v165_v27  ;;  %v389_v7 = vand.u32 4294901760, %v388_v3 }
   0xe   :  { %v39_v9 = vadd.f32 %v6010_v5, %v38_v8  ;;  %174 = vmatpush.msra.mxu1 %v173_v39  ;;  %343 = vmatpush.msrb.mxu2 %v6126_v49  ;;  %v394_v8 = vsub.f32 %v6157_v62, %v393_v4 }
   0xf   :  { %283 = vmatpush.msrb.mxu0 %v171_v32 }
  0x10   :  { %v6096_v10 = vsel %vm40_vm1, %v6010_v5, %v39_v9  ;;  %180 = vmatpush.msra.mxu1 %v179_v42  ;;  %345 = vmatpush.msrb.mxu2 %v6135_v52 }
  0x11   :  { %287 = vmatpush.msrb.mxu0 %v177_v37  ;;  %v102_v37 = vld [vmem:[%s7629_s3 + $0x50] sm:$0xff] }
  0x12   :  { %186 = vmatpush.msra.mxu1 %v185_v44  ;;  %347 = vmatpush.msrb.mxu2 %v6145_v56  ;;  %v6203_v40 = vand.u32 4294901760, %v102_v37 }
  0x13   :  { %291 = vmatpush.msrb.mxu0 %v183_v41  ;;  %v101_v41 = vld [vmem:[%s7629_s3 + $0x48] sm:$0xff] }
  0x14   :  { %314 = vmatpush.msrb.mxu1 %v126_v22  ;;  %349 = vmatpush.msrb.mxu2 %v6159_v63  ;;  %v6216_v43 = vsub.f32 %v102_v37, %v6203_v40  ;;  %v6218_v44 = vand.u32 4294901760, %v101_v41  ;;  %v979_v37 = vld [vmem:[%s7630_s4 + $0x8] sm:$0xff] }
  0x16   :  { %316 = vmatpush.msrb.mxu1 %v128_v25 }
  0x18   :  { %318 = vmatpush.msrb.mxu1 %v130_v29 }
  0x1a   :  { %320 = vmatpush.msrb.mxu1 %v132_v34  ;;  %v103_v34 = vld [vmem:[%s7629_s3 + $0x58] sm:$0xff] }
  0x76   :  { %v31_v11 = vpop.xlane.xlu0 %30 }
  0x77   :  { %v42_v12 = vmul.f32 %v6096_v10, %v31_v11  ;;  %v395_v11 = vand.u32 4294901760, %v394_v8 }
  0x79   :  { %v6099_v13 = vsub.f32 %v26_v0, %v42_v12 }
  0x7b   :  { %v46_v14 = vmul.f32 %v6099_v13, %v6099_v13 }
  0x7d   :  { %v48_v15 = vsel %vm28_vm0, %v46_v14, 0.0 }
  0x7e   :  { %49 = vadd.xlane.f32.xlu1 %v48_v15  ;;  %v34_v16 = vpop.xlane.xlu0 %33 }
  0x7f   :  { %v43_v17 = vmul.f32 %v6096_v10, %v34_v16 }
  0x81   :  { %v6105_v18 = vsub.f32 %v27_v2, %v43_v17  ;;  %v383_v2 = vand.u32 4294901760, %v382_v60 }
  0x83   :  { %v47_v19 = vmul.f32 %v6105_v18, %v6105_v18  ;;  %384 = vmatpush.msrb.mxu3 %v383_v2 }
  0x85   :  { %v51_v20 = vsel %vm28_vm0, %v47_v19, 0.0  ;;  %390 = vmatpush.msrb.mxu3 %v389_v7 }
  0x86   :  { %52 = vadd.xlane.f32.xlu1 %v51_v20 }
  0x87   :  { %396 = vmatpush.msrb.mxu3 %v395_v11 }
  0xf1   :  { %v50_v45 = vpop.xlane.xlu1 %49 }
  0xf2   :  { %v54_v46 = vmul.f32 %v50_v45, %v6096_v10 }
  0xf4   :  { %v56_v48 = vadd.f32 1e-05, %v54_v46  ;;  %v100_v46 = vld [vmem:[%s7629_s3 + $0x40] sm:$0xff] }
  0xf6   :  { %6011 = vrsqrt.f32 %v56_v48  ;;  %vm64_vm3 = vweird.f32 %v56_v48 }
  0xf9   :  { %v53_v57 = vpop.xlane.xlu1 %52 }
  0xfa   :  { %v55_v59 = vmul.f32 %v53_v57, %v6096_v10  ;;  %v399_v10 = vand.u32 4294901760, %v6167_v6  ;;  %v6239_v57 = vand.u32 4294901760, %v100_v46 }
  0xfc   :  { %v6012_v0 = vpop.eup %6011  ;;  %v57_v1 = vadd.f32 1e-05, %v55_v59  ;;  %v400_v14 = vsub.f32 %v6167_v6, %v399_v10  ;;  %v6256_v59 = vsub.f32 %v100_v46, %v6239_v57 }
  0xfd   :  { %v59_v5 = vmul.f32 %v6012_v0, %v56_v48  ;;  %vm65_vm2 = vweird.f32 %v6012_v0 }
  0xfe   :  { %6013 = vrsqrt.f32 %v57_v1  ;;  %v401_v16 = vand.u32 4294901760, %v400_v14  ;;  %vm66_vm4 = vmor %vm64_vm3, %vm65_vm2  ;;  %vm74_vm6 = vweird.f32 %v57_v1  ;;  %v104_v14 = vld [vmem:[%s7629_s3 + $0x60] sm:$0xff] }
  0xff   :  { %v60_v9 = vmul.f32 %v6012_v0, %v59_v5 }
 0x100   :  { %402 = vmatpush.msrb.mxu3 %v401_v16  ;;  %v6322_v16 = vand.u32 4294901760, %v104_v14 }
 0x101   :  { %v61_v12 = vmul.f32 0.5, %v60_v9 }
 0x103   :  { %v62_v15 = vsub.f32 1.5, %v61_v12 }
 0x104   :  { %v6014_v17 = vpop.eup %6013 }
 0x105   :  { %v63_v19 = vmul.f32 %v6012_v0, %v62_v15  ;;  %v69_v20 = vmul.f32 %v6014_v17, %v57_v1  ;;  %vm75_vm5 = vweird.f32 %v6014_v17  ;;  %v615_v1 = vand.u32 4294901760, %v6256_v59 }
 0x106   :  { %vm76_vm7 = vmor %vm74_vm6, %vm75_vm5 }
 0x107   :  { %v67_v22 = vsel %vm66_vm4, %v6012_v0, %v63_v19  ;;  %v70_v23 = vmul.f32 %v6014_v17, %v69_v20 }
 0x108   :  { %v78_v25 = vmul.f32 %v67_v22, %v6099_v13  ;;  %v6190_v13 = vand.u32 4294901760, %v103_v34 }
 0x109   :  { %v71_v26 = vmul.f32 0.5, %v70_v23 }
 0x10a   :  { %v84_v27 = vmul.f32 %v6007_v21, %v78_v25  ;;  %v6201_v39 = vsub.f32 %v103_v34, %v6190_v13  ;;  %v980_v34 = vld [vmem:[%s7630_s4 + $0x10] sm:$0xff] }
 0x10b   :  { %v72_v28 = vsub.f32 1.5, %v71_v26 }
 0x10c   :  { %v90_v29 = vadd.f32 %v6008_v24, %v84_v27  ;;  %v597_v48 = vand.u32 4294901760, %v6201_v39 }
 0x10d   :  { %v73_v30 = vmul.f32 %v6014_v17, %v72_v28 }
 0x10e   :  { %v109_v31 = vsel %vm28_vm0, %v90_v29, 0 }
 0x10f   :  { %v6184_v32 = vand.u32 4294901760, %v109_v31  ;;  %v77_v33 = vsel %vm76_vm7, %v6014_v17, %v73_v30 }
 0x110   :  { %v79_v35 = vmul.f32 %v77_v33, %v6105_v18 }
 0x111   :  { %v6193_v36 = vsub.f32 %v109_v31, %v6184_v32  ;;  %188 = vmatmul.f32.vlgmr.msra.gmra.mxu1 %v6184_v32  ;;  %v981_v31 = vld [vmem:[%s7630_s4 + $0x18] sm:$0xff] }
 0x112   :  { %v85_v38 = vmul.f32 %v6007_v21, %v79_v35  ;;  %460 = vmatpush.msra.mxu1 %v6126_v49  ;;  %v6337_v21 = vsub.f32 %v104_v14, %v6322_v16  ;;  %v6372_v33 = vand.u32 4294901760, %v981_v31 }
 0x113   :  { %222 = vmatmul.f32.vlgmr.msra.gmra.mxu2 %v6193_v36  ;;  %v6207_v18 = vand.u32 4294901760, %v6193_v36 }
 0x114   :  { %v91_v42 = vadd.f32 %v6008_v24, %v85_v38  ;;  %495 = vmatpush.msra.mxu2 %v381_v54  ;;  %462 = vmatpush.msra.mxu1 %v6135_v52  ;;  %v6237_v54 = vsub.f32 %v101_v41, %v6218_v44  ;;  %v831_v25 = vand.u32 4294901760, %v6337_v21  ;;  %v6381_v35 = vsub.f32 %v981_v31, %v6372_v33 }
 0x115   :  { %254 = vmatmul.f32.vlgmr.msra.gmra.mxu3 %v6207_v18  ;;  %v137_v45 = vsub.f32 %v6193_v36, %v6207_v18 }
 0x116   :  { %v112_v47 = vsel %vm28_vm0, %v91_v42, 0  ;;  %530 = vmatpush.msra.mxu3 %v6126_v49  ;;  %499 = vmatpush.msra.mxu2 %v387_v61  ;;  %v603_v49 = vand.u32 4294901760, %v6216_v43  ;;  %v609_v61 = vand.u32 4294901760, %v6237_v54  ;;  %v832_v28 = vsub.f32 %v6337_v21, %v831_v25 }
 0x117   :  { %v6231_v50 = vand.u32 4294901760, %v112_v47  ;;  %v6233_v53 = vand.u32 4294901760, %v137_v45  ;;  %464 = vmatpush.msra.mxu1 %v6145_v56  ;;  %v1045_v41 = vand.u32 4294901760, %v6381_v35 }
 0x118   :  { %532 = vmatpush.msra.mxu3 %v6135_v52  ;;  %503 = vmatpush.msra.mxu2 %v393_v4  ;;  %v598_v52 = vsub.f32 %v6201_v39, %v597_v48  ;;  %v610_v2 = vsub.f32 %v6237_v54, %v609_v61  ;;  %v107_v4 = vld [vmem:[%s7629_s3 + $0x78] sm:$0xff]  ;;  %v833_v30 = vand.u32 4294901760, %v832_v28  ;;  %v987_v28 = vld [vmem:[%s7630_s4 + $0x48] sm:$0xff] }
 0x119   :  { %v6246_v58 = vsub.f32 %v112_v47, %v6231_v50  ;;  %139 = vmatmul.f32.vlgmr.msra.gmra.mxu0 %v6233_v53  ;;  %192 = vmatmul.f32.gmra.mxu1 %v6231_v50  ;;  %v6292_v5 = vand.u32 4294901760, %v107_v4  ;;  %v1046_v45 = vsub.f32 %v6381_v35, %v1045_v41 }
 0x11a   :  { %426 = vmatpush.msra.mxu0 %v6133_v51  ;;  %466 = vmatpush.msra.mxu1 %v6159_v63  ;;  %v604_v51 = vsub.f32 %v6216_v43, %v603_v49 }
 0x11b   :  { %227 = vmatmul.f32.gmra.mxu2 %v6246_v58  ;;  %v6260_v60 = vand.u32 4294901760, %v6246_v58  ;;  %534 = vmatpush.msra.mxu3 %v6145_v56  ;;  %v599_v56 = vand.u32 4294901760, %v598_v52  ;;  %v6301_v8 = vsub.f32 %v107_v4, %v6292_v5 }
 0x11c   :  { %429 = vmatpush.msra.mxu0 %v6143_v55  ;;  %507 = vmatpush.msra.mxu2 %v399_v10  ;;  %v605_v3 = vand.u32 4294901760, %v604_v51  ;;  %v105_v10 = vld [vmem:[%s7629_s3 + $0x68] sm:$0xff]  ;;  %v985_v51 = vld [vmem:[%s7630_s4 + $0x38] sm:$0xff] }
 0x11d   :  { %260 = vmatmul.f32.gmra.mxu3 %v6260_v60  ;;  %v145_v0 = vsub.f32 %v6246_v58, %v6260_v60  ;;  %v6313_v12 = vand.u32 4294901760, %v105_v10  ;;  %v813_v15 = vand.u32 4294901760, %v6301_v8 }
 0x11e   :  { %432 = vmatpush.msra.mxu0 %v6157_v62  ;;  %536 = vmatpush.msra.mxu3 %v6159_v63  ;;  %v616_v62 = vsub.f32 %v6256_v59, %v615_v1  ;;  %v611_v63 = vand.u32 4294901760, %v610_v2 }
 0x11f   :  { %v6276_v55 = vand.u32 4294901760, %v145_v0  ;;  %v6327_v17 = vsub.f32 %v105_v10, %v6313_v12  ;;  %v814_v20 = vsub.f32 %v6301_v8, %v813_v15  ;;  %v6444_v0 = vand.u32 4294901760, %v985_v51 }
 0x120   :  { %435 = vmatpush.msra.mxu0 %v6167_v6  ;;  %v106_v6 = vld [vmem:[%s7629_s3 + $0x70] sm:$0xff]  ;;  %v617_v7 = vand.u32 4294901760, %v616_v62  ;;  %v983_v62 = vld [vmem:[%s7630_s4 + $0x28] sm:$0xff] }
 0x121   :  { %147 = vmatmul.f32.gmra.mxu0 %v6276_v55  ;;  %322 = vmatmul.f32.vlgmr.msrb.gmra.mxu1 %v6184_v32  ;;  %v6303_v9 = vand.u32 4294901760, %v106_v6  ;;  %v825_v22 = vand.u32 4294901760, %v6327_v17  ;;  %v815_v24 = vand.u32 4294901760, %v814_v20  ;;  %v6453_v2 = vsub.f32 %v985_v51, %v6444_v0 }
 0x122   :  { %600 = vmatpush.msrb.mxu1 %v599_v56  ;;  %v984_v56 = vld [vmem:[%s7630_s4 + $0x30] sm:$0xff]  ;;  %v6465_v4 = vand.u32 4294901760, %v983_v62 }
 0x123   :  { %355 = vmatmul.f32.vlgmr.msrb.gmra.mxu2 %v6233_v53  ;;  %v6311_v11 = vsub.f32 %v106_v6, %v6303_v9  ;;  %v826_v26 = vsub.f32 %v6327_v17, %v825_v22  ;;  %v1261_v6 = vand.u32 4294901760, %v6453_v2 }
 0x124   :  { %642 = vmatpush.msrb.mxu2 %v6201_v39  ;;  %606 = vmatpush.msrb.mxu1 %v605_v3  ;;  %v6393_v39 = vand.u32 4294901760, %v979_v37  ;;  %v6455_v3 = vand.u32 4294901760, %v984_v56 }
 0x125   :  { %404 = vmatmul.f32.vlgmr.msrb.gmra.mxu3 %v6184_v32  ;;  %v819_v19 = vand.u32 4294901760, %v6311_v11  ;;  %v827_v29 = vand.u32 4294901760, %v826_v26  ;;  %v1262_v10 = vsub.f32 %v6453_v2, %v1261_v6 }
 0x126   :  { %676 = vmatpush.msrb.mxu3 %v6190_v13  ;;  %645 = vmatpush.msrb.mxu2 %v6216_v43  ;;  %v6405_v43 = vsub.f32 %v979_v37, %v6393_v39 }
 0x127   :  { %612 = vmatpush.msrb.mxu1 %v611_v63  ;;  %v820_v23 = vsub.f32 %v6311_v11, %v819_v19  ;;  %v6463_v63 = vsub.f32 %v984_v56, %v6455_v3  ;;  %v990_v56 = vld [vmem:[%s7630_s4 + $0x60] sm:$0xff] }
 0x128   :  { %678 = vmatpush.msrb.mxu3 %v6203_v40  ;;  %648 = vmatpush.msrb.mxu2 %v6237_v54  ;;  %v1057_v47 = vand.u32 4294901760, %v6405_v43  ;;  %v1047_v54 = vand.u32 4294901760, %v1046_v45 }
 0x129   :  { %293 = vmatmul.f32.vlgmr.msrb.gmra.mxu0 %v6184_v32  ;;  %326 = vmatmul.f32.gmra.mxu1 %v6231_v50  ;;  %v821_v27 = vand.u32 4294901760, %v820_v23  ;;  %v989_v23 = vld [vmem:[%s7630_s4 + $0x58] sm:$0xff] }
 0x12a   :  { %559 = vmatpush.msrb.mxu0 %v6190_v13  ;;  %618 = vmatpush.msrb.mxu1 %v617_v7 }
 0x12b   :  { %363 = vmatmul.f32.gmra.mxu2 %v6276_v55  ;;  %680 = vmatpush.msrb.mxu3 %v6218_v44 }
 0x12c   :  { %561 = vmatpush.msrb.mxu0 %v6203_v40  ;;  %651 = vmatpush.msrb.mxu2 %v6256_v59 }
 0x12d   :  { %408 = vmatmul.f32.gmra.mxu3 %v6231_v50 }
 0x12e   :  { %563 = vmatpush.msrb.mxu0 %v6218_v44  ;;  %682 = vmatpush.msrb.mxu3 %v6239_v57 }
 0x130   :  { %565 = vmatpush.msrb.mxu0 %v6239_v57 }
 0x131   :  { %297 = vmatmul.f32.gmra.mxu0 %v6231_v50  ;;  %470 = vmatmul.f32.vlgmr.msra.gmra.mxu1 %v6207_v18 }
 0x132   :  { %746 = vmatpush.msra.mxu1 %v6190_v13  ;;  %v6383_v13 = vand.u32 4294901760, %v980_v34 }
 0x133   :  { %509 = vmatmul.f32.vlgmr.msra.gmra.mxu2 %v6184_v32 }
 0x134   :  { %775 = vmatpush.msra.mxu2 %v6292_v5  ;;  %748 = vmatpush.msra.mxu1 %v6203_v40  ;;  %v6391_v38 = vsub.f32 %v980_v34, %v6383_v13  ;;  %v978_v40 = vld [vmem:[%s7630_s4] sm:$0xff] }
 0x135   :  { %538 = vmatmul.f32.vlgmr.msra.gmra.mxu3 %v6184_v32  ;;  %v6401_v42 = vand.u32 4294901760, %v978_v40 }
 0x136   :  { %816 = vmatpush.msra.mxu3 %v815_v24  ;;  %777 = vmatpush.msra.mxu2 %v6303_v9  ;;  %v6526_v24 = vand.u32 4294901760, %v989_v23 }
 0x137   :  { %750 = vmatpush.msra.mxu1 %v6218_v44  ;;  %v1051_v44 = vand.u32 4294901760, %v6391_v38  ;;  %v6417_v46 = vsub.f32 %v978_v40, %v6401_v42 }
 0x138   :  { %822 = vmatpush.msra.mxu3 %v821_v27  ;;  %779 = vmatpush.msra.mxu2 %v6313_v12  ;;  %v6534_v26 = vsub.f32 %v989_v23, %v6526_v24 }
 0x139   :  { %438 = vmatmul.f32.vlgmr.msra.gmra.mxu0 %v6193_v36  ;;  %476 = vmatmul.f32.gmra.mxu1 %v6260_v60 }
 0x13a   :  { %711 = vmatpush.msra.mxu0 %v597_v48  ;;  %752 = vmatpush.msra.mxu1 %v6239_v57  ;;  %v1052_v48 = vsub.f32 %v6391_v38, %v1051_v44  ;;  %v1063_v57 = vand.u32 4294901760, %v6417_v46  ;;  %v1477_v31 = vand.u32 4294901760, %v6534_v26 }
 0x13b   :  { %513 = vmatmul.f32.gmra.mxu2 %v6231_v50  ;;  %828 = vmatpush.msra.mxu3 %v827_v29 }
 0x13c   :  { %715 = vmatpush.msra.mxu0 %v603_v49  ;;  %781 = vmatpush.msra.mxu2 %v6322_v16  ;;  %v1058_v49 = vsub.f32 %v6405_v43, %v1057_v47  ;;  %v1053_v52 = vand.u32 4294901760, %v1052_v48  ;;  %v1064_v59 = vsub.f32 %v6417_v46, %v1063_v57  ;;  %v1478_v37 = vsub.f32 %v6534_v26, %v1477_v31 }
 0x13d   :  { %542 = vmatmul.f32.gmra.mxu3 %v6231_v50 }
 0x13e   :  { %719 = vmatpush.msra.mxu0 %v609_v61  ;;  %834 = vmatpush.msra.mxu3 %v833_v30  ;;  %v1059_v61 = vand.u32 4294901760, %v1058_v49  ;;  %v6546_v30 = vand.u32 4294901760, %v987_v28 }
 0x140   :  { %723 = vmatpush.msra.mxu0 %v615_v1  ;;  %v1065_v1 = vand.u32 4294901760, %v1064_v59  ;;  %v6555_v34 = vsub.f32 %v987_v28, %v6546_v30  ;;  %v991_v59 = vld [vmem:[%s7630_s4 + $0x68] sm:$0xff]  ;;  %v1861_v28 = vld [vmem:[%s7631_s5 + $0x18] sm:$0xff] }
 0x141   :  { %443 = vmatmul.f32.gmra.mxu0 %v6246_v58  ;;  %620 = vmatmul.f32.vlgmr.msrb.gmra.mxu1 %v6184_v32  ;;  %v6619_v51 = vand.u32 4294901760, %v991_v59 }
 0x142   :  { %892 = vmatpush.msrb.mxu1 %v6292_v5 }
 0x143   :  { %654 = vmatmul.f32.vlgmr.msrb.gmra.mxu2 %v6193_v36 }
 0x144   :  { %927 = vmatpush.msrb.mxu2 %v813_v15  ;;  %894 = vmatpush.msrb.mxu1 %v6303_v9  ;;  %v1263_v15 = vand.u32 4294901760, %v1262_v10 }
 0x145   :  { %686 = vmatmul.f32.vlgmr.msrb.gmra.mxu3 %v6207_v18 }
 0x146   :  { %962 = vmatpush.msrb.mxu3 %v6292_v5  ;;  %931 = vmatpush.msrb.mxu2 %v819_v19  ;;  %v982_v5 = vld [vmem:[%s7630_s4 + $0x20] sm:$0xff] }
 0x147   :  { %896 = vmatpush.msrb.mxu1 %v6313_v12  ;;  %v6474_v7 = vand.u32 4294901760, %v982_v5 }
 0x148   :  { %964 = vmatpush.msrb.mxu3 %v6303_v9  ;;  %935 = vmatpush.msrb.mxu2 %v825_v22  ;;  %v1267_v9 = vand.u32 4294901760, %v6463_v63 }
 0x149   :  { %571 = vmatmul.f32.vlgmr.msrb.gmra.mxu0 %v6233_v53  ;;  %624 = vmatmul.f32.gmra.mxu1 %v6231_v50 }
 0x14a   :  { %858 = vmatpush.msrb.mxu0 %v6301_v8  ;;  %898 = vmatpush.msrb.mxu1 %v6322_v16  ;;  %v6479_v8 = vsub.f32 %v983_v62, %v6465_v4  ;;  %v1268_v14 = vsub.f32 %v6463_v63, %v1267_v9 }
 0x14b   :  { %659 = vmatmul.f32.gmra.mxu2 %v6246_v58  ;;  %966 = vmatpush.msrb.mxu3 %v6313_v12 }
 0x14c   :  { %861 = vmatpush.msrb.mxu0 %v6311_v11  ;;  %939 = vmatpush.msrb.mxu2 %v831_v25  ;;  %v6489_v11 = vsub.f32 %v982_v5, %v6474_v7  ;;  %v1273_v12 = vand.u32 4294901760, %v6479_v8  ;;  %v1269_v19 = vand.u32 4294901760, %v1268_v14  ;;  %v988_v25 = vld [vmem:[%s7630_s4 + $0x50] sm:$0xff] }
 0x14d   :  { %692 = vmatmul.f32.gmra.mxu3 %v6260_v60  ;;  %v6536_v27 = vand.u32 4294901760, %v988_v25 }
 0x14e   :  { %864 = vmatpush.msrb.mxu0 %v6327_v17  ;;  %968 = vmatpush.msrb.mxu3 %v6322_v16  ;;  %v1279_v16 = vand.u32 4294901760, %v6489_v11  ;;  %v1274_v17 = vsub.f32 %v6479_v8, %v1273_v12 }
 0x14f   :  { %v6544_v29 = vsub.f32 %v988_v25, %v6536_v27 }
 0x150   :  { %867 = vmatpush.msrb.mxu0 %v6337_v21  ;;  %v1280_v20 = vsub.f32 %v6489_v11, %v1279_v16  ;;  %v1275_v21 = vand.u32 4294901760, %v1274_v17 }
 0x151   :  { %579 = vmatmul.f32.gmra.mxu0 %v6276_v55  ;;  %754 = vmatmul.f32.vlgmr.msra.gmra.mxu1 %v6184_v32 }
 0x152   :  { %1048 = vmatpush.msra.mxu1 %v1047_v54  ;;  %v1281_v22 = vand.u32 4294901760, %v1280_v20 }
 0x153   :  { %787 = vmatmul.f32.vlgmr.msra.gmra.mxu2 %v6233_v53 }
 0x154   :  { %1090 = vmatpush.msra.mxu2 %v6381_v35  ;;  %1054 = vmatpush.msra.mxu1 %v1053_v52 }
 0x155   :  { %836 = vmatmul.f32.vlgmr.msra.gmra.mxu3 %v6184_v32 }
 0x156   :  { %1124 = vmatpush.msra.mxu3 %v6372_v33  ;;  %1093 = vmatpush.msra.mxu2 %v6391_v38 }
 0x157   :  { %1060 = vmatpush.msra.mxu1 %v1059_v61 }
 0x158   :  { %1126 = vmatpush.msra.mxu3 %v6383_v13  ;;  %1096 = vmatpush.msra.mxu2 %v6405_v43 }
 0x159   :  { %725 = vmatmul.f32.vlgmr.msra.gmra.mxu0 %v6184_v32  ;;  %758 = vmatmul.f32.gmra.mxu1 %v6231_v50 }
 0x15a   :  { %1007 = vmatpush.msra.mxu0 %v6372_v33  ;;  %1066 = vmatpush.msra.mxu1 %v1065_v1  ;;  %v6629_v1 = vsub.f32 %v991_v59, %v6619_v51 }
 0x15b   :  { %795 = vmatmul.f32.gmra.mxu2 %v6276_v55  ;;  %1128 = vmatpush.msra.mxu3 %v6393_v39 }
 0x15c   :  { %1009 = vmatpush.msra.mxu0 %v6383_v13  ;;  %1099 = vmatpush.msra.mxu2 %v6417_v46  ;;  %v1705_v5 = vand.u32 4294901760, %v6629_v1 }
 0x15d   :  { %840 = vmatmul.f32.gmra.mxu3 %v6231_v50 }
 0x15e   :  { %1011 = vmatpush.msra.mxu0 %v6393_v39  ;;  %1130 = vmatpush.msra.mxu3 %v6401_v42 }
 0x160   :  { %1013 = vmatpush.msra.mxu0 %v6401_v42 }
 0x161   :  { %729 = vmatmul.f32.gmra.mxu0 %v6231_v50  ;;  %902 = vmatmul.f32.vlgmr.msrb.gmra.mxu1 %v6207_v18 }
 0x162   :  { %1194 = vmatpush.msrb.mxu1 %v6372_v33  ;;  %v986_v33 = vld [vmem:[%s7630_s4 + $0x40] sm:$0xff] }
 0x163   :  { %941 = vmatmul.f32.vlgmr.msrb.gmra.mxu2 %v6184_v32  ;;  %v6557_v35 = vand.u32 4294901760, %v986_v33 }
 0x164   :  { %1223 = vmatpush.msrb.mxu2 %v6444_v0  ;;  %1196 = vmatpush.msrb.mxu1 %v6383_v13  ;;  %v1483_v13 = vand.u32 4294901760, %v6544_v29 }
 0x165   :  { %970 = vmatmul.f32.vlgmr.msrb.gmra.mxu3 %v6184_v32  ;;  %v6569_v38 = vsub.f32 %v986_v33, %v6557_v35 }
 0x166   :  { %1264 = vmatpush.msrb.mxu3 %v1263_v15  ;;  %1225 = vmatpush.msrb.mxu2 %v6455_v3  ;;  %v1484_v40 = vsub.f32 %v6544_v29, %v1483_v13 }
 0x167   :  { %1198 = vmatpush.msrb.mxu1 %v6393_v39  ;;  %v1489_v39 = vand.u32 4294901760, %v6555_v34 }
 0x168   :  { %1270 = vmatpush.msrb.mxu3 %v1269_v19  ;;  %1227 = vmatpush.msrb.mxu2 %v6465_v4 }
 0x169   :  { %870 = vmatmul.f32.vlgmr.msrb.gmra.mxu0 %v6193_v36  ;;  %908 = vmatmul.f32.gmra.mxu1 %v6260_v60  ;;  %v1490_v43 = vsub.f32 %v6555_v34, %v1489_v39 }
 0x16a   :  { %1159 = vmatpush.msrb.mxu0 %v1045_v41  ;;  %1200 = vmatpush.msrb.mxu1 %v6401_v42  ;;  %v1479_v41 = vand.u32 4294901760, %v1478_v37  ;;  %v1495_v42 = vand.u32 4294901760, %v6569_v38 }
 0x16b   :  { %945 = vmatmul.f32.gmra.mxu2 %v6231_v50  ;;  %1276 = vmatpush.msrb.mxu3 %v1275_v21  ;;  %v1491_v46 = vand.u32 4294901760, %v1490_v43 }
 0x16c   :  { %1163 = vmatpush.msrb.mxu0 %v1051_v44  ;;  %1229 = vmatpush.msrb.mxu2 %v6474_v7  ;;  %v1485_v44 = vand.u32 4294901760, %v1484_v40  ;;  %v1496_v45 = vsub.f32 %v6569_v38, %v1495_v42 }
 0x16d   :  { %974 = vmatmul.f32.gmra.mxu3 %v6231_v50 }
 0x16e   :  { %1167 = vmatpush.msrb.mxu0 %v1057_v47  ;;  %1282 = vmatpush.msrb.mxu3 %v1281_v22  ;;  %v993_v47 = vld [vmem:[%s7630_s4 + $0x78] sm:$0xff]  ;;  %v1497_v54 = vand.u32 4294901760, %v1496_v45 }
 0x16f   :  { %v6597_v48 = vand.u32 4294901760, %v993_v47 }
 0x170   :  { %1171 = vmatpush.msrb.mxu0 %v1063_v57  ;;  %v992_v57 = vld [vmem:[%s7630_s4 + $0x70] sm:$0xff] }
 0x171   :  { %875 = vmatmul.f32.gmra.mxu0 %v6246_v58  ;;  %1068 = vmatmul.f32.vlgmr.msra.gmra.mxu1 %v6184_v32  ;;  %v6605_v49 = vsub.f32 %v993_v47, %v6597_v48  ;;  %v6607_v52 = vand.u32 4294901760, %v992_v57 }
 0x172   :  { %1340 = vmatpush.msra.mxu1 %v6444_v0 }
 0x173   :  { %1102 = vmatmul.f32.vlgmr.msra.gmra.mxu2 %v6193_v36  ;;  %v6617_v61 = vsub.f32 %v992_v57, %v6607_v52 }
 0x174   :  { %1375 = vmatpush.msra.mxu2 %v1261_v6  ;;  %1342 = vmatpush.msra.mxu1 %v6455_v3 }
 0x175   :  { %1134 = vmatmul.f32.vlgmr.msra.gmra.mxu3 %v6207_v18 }
 0x176   :  { %1410 = vmatpush.msra.mxu3 %v6444_v0  ;;  %1379 = vmatpush.msra.mxu2 %v1267_v9  ;;  %v1693_v0 = vand.u32 4294901760, %v6605_v49  ;;  %v1706_v9 = vsub.f32 %v6629_v1, %v1705_v5 }
 0x177   :  { %1344 = vmatpush.msra.mxu1 %v6465_v4 }
 0x178   :  { %1412 = vmatpush.msra.mxu3 %v6455_v3  ;;  %1383 = vmatpush.msra.mxu2 %v1273_v12  ;;  %v1699_v3 = vand.u32 4294901760, %v6617_v61  ;;  %v1707_v17 = vand.u32 4294901760, %v1706_v9 }
 0x179   :  { %1019 = vmatmul.f32.vlgmr.msra.gmra.mxu0 %v6233_v53  ;;  %1072 = vmatmul.f32.gmra.mxu1 %v6231_v50 }
 0x17a   :  { %1306 = vmatpush.msra.mxu0 %v6453_v2  ;;  %1346 = vmatpush.msra.mxu1 %v6474_v7  ;;  %v6631_v2 = vand.u32 4294901760, %v990_v56  ;;  %v1700_v6 = vsub.f32 %v6617_v61, %v1699_v3 }
 0x17b   :  { %1107 = vmatmul.f32.gmra.mxu2 %v6246_v58  ;;  %1414 = vmatpush.msra.mxu3 %v6465_v4 }
 0x17c   :  { %1309 = vmatpush.msra.mxu0 %v6463_v63  ;;  %1387 = vmatpush.msra.mxu2 %v1279_v16  ;;  %v1694_v63 = vsub.f32 %v6605_v49, %v1693_v0  ;;  %v6643_v4 = vsub.f32 %v990_v56, %v6631_v2  ;;  %v1701_v10 = vand.u32 4294901760, %v1700_v6 }
 0x17d   :  { %1140 = vmatmul.f32.gmra.mxu3 %v6260_v60 }
 0x17e   :  { %1312 = vmatpush.msra.mxu0 %v6479_v8  ;;  %1416 = vmatpush.msra.mxu3 %v6474_v7  ;;  %v1695_v7 = vand.u32 4294901760, %v1694_v63  ;;  %v1711_v8 = vand.u32 4294901760, %v6643_v4 }
 0x180   :  { %1315 = vmatpush.msra.mxu0 %v6489_v11  ;;  %v1712_v14 = vsub.f32 %v6643_v4, %v1711_v8 }
 0x181   :  { %1027 = vmatmul.f32.gmra.mxu0 %v6276_v55  ;;  %1202 = vmatmul.f32.vlgmr.msrb.gmra.mxu1 %v6184_v32 }
 0x182   :  { %1480 = vmatpush.msrb.mxu1 %v1479_v41  ;;  %v1713_v21 = vand.u32 4294901760, %v1712_v14 }
 0x183   :  { %1235 = vmatmul.f32.vlgmr.msrb.gmra.mxu2 %v6233_v53 }
 0x184   :  { %1522 = vmatpush.msrb.mxu2 %v6534_v26  ;;  %1486 = vmatpush.msrb.mxu1 %v1485_v44 }
 0x185   :  { %1284 = vmatmul.f32.vlgmr.msrb.gmra.mxu3 %v6184_v32 }
 0x186   :  { %1556 = vmatpush.msrb.mxu3 %v6526_v24  ;;  %1525 = vmatpush.msrb.mxu2 %v6544_v29 }
 0x187   :  { %1492 = vmatpush.msrb.mxu1 %v1491_v46 }
 0x188   :  { %1558 = vmatpush.msrb.mxu3 %v6536_v27  ;;  %1528 = vmatpush.msrb.mxu2 %v6555_v34 }
 0x189   :  { %1173 = vmatmul.f32.vlgmr.msrb.gmra.mxu0 %v6184_v32  ;;  %1206 = vmatmul.f32.gmra.mxu1 %v6231_v50 }
 0x18a   :  { %1439 = vmatpush.msrb.mxu0 %v6526_v24  ;;  %1498 = vmatpush.msrb.mxu1 %v1497_v54 }
 0x18b   :  { %1243 = vmatmul.f32.gmra.mxu2 %v6276_v55  ;;  %1560 = vmatpush.msrb.mxu3 %v6546_v30 }
 0x18c   :  { %1441 = vmatpush.msrb.mxu0 %v6536_v27  ;;  %1531 = vmatpush.msrb.mxu2 %v6569_v38 }
 0x18d   :  { %1288 = vmatmul.f32.gmra.mxu3 %v6231_v50 }
 0x18e   :  { %v189_v62 = vpop.f32.mrf.mxu1  ;;  %1443 = vmatpush.msrb.mxu0 %v6546_v30  ;;  %1562 = vmatpush.msrb.mxu3 %v6557_v35 }
 0x190   :  { %1445 = vmatpush.msrb.mxu0 %v6557_v35 }
 0x191   :  { %1177 = vmatmul.f32.gmra.mxu0 %v6231_v50  ;;  %1350 = vmatmul.f32.vlgmr.msra.gmra.mxu1 %v6207_v18 }
 0x192   :  { %1626 = vmatpush.msra.mxu1 %v6526_v24 }
 0x193   :  { %1389 = vmatmul.f32.vlgmr.msra.gmra.mxu2 %v6184_v32 }
 0x194   :  { %1655 = vmatpush.msra.mxu2 %v6597_v48  ;;  %1628 = vmatpush.msra.mxu1 %v6536_v27 }
 0x195   :  { %1418 = vmatmul.f32.vlgmr.msra.gmra.mxu3 %v6184_v32 }
 0x196   :  { %v140_v11 = vpop.f32.mrf.mxu0  ;;  %v193_v12 = vpop.f32.mrf.mxu1  ;;  %1696 = vmatpush.msra.mxu3 %v1695_v7  ;;  %1657 = vmatpush.msra.mxu2 %v6607_v52 }
 0x197   :  { %v190_v15 = vadd.f32 %v189_v62, %v140_v11  ;;  %v223_v16 = vpop.f32.mrf.mxu2  ;;  %1630 = vmatpush.msra.mxu1 %v6546_v30  ;;  %v6686_v30 = vand.u32 4294901760, %v1861_v28 }
 0x198   :  { %v255_v19 = vpop.f32.mrf.mxu3  ;;  %1702 = vmatpush.msra.mxu3 %v1701_v10  ;;  %1659 = vmatpush.msra.mxu2 %v6619_v51 }
 0x199   :  { %v224_v20 = vadd.f32 %v223_v16, %v190_v15  ;;  %1318 = vmatmul.f32.vlgmr.msra.gmra.mxu0 %v6193_v36  ;;  %1356 = vmatmul.f32.gmra.mxu1 %v6260_v60  ;;  %v6694_v34 = vsub.f32 %v1861_v28, %v6686_v30  ;;  %v1864_v15 = vld [vmem:[%s7631_s5 + $0x30] sm:$0xff] }
 0x19a   :  { %1591 = vmatpush.msra.mxu0 %v1477_v31  ;;  %1632 = vmatpush.msra.mxu1 %v6557_v35  ;;  %v1860_v31 = vld [vmem:[%s7631_s5 + $0x10] sm:$0xff] }
 0x19b   :  { %v256_v22 = vadd.f32 %v255_v19, %v224_v20  ;;  %1393 = vmatmul.f32.gmra.mxu2 %v6231_v50  ;;  %1708 = vmatpush.msra.mxu3 %v1707_v17  ;;  %v6696_v35 = vand.u32 4294901760, %v1860_v31  ;;  %v1925_v41 = vand.u32 4294901760, %v6694_v34  ;;  %v6779_v20 = vand.u32 4294901760, %v1864_v15 }
 0x19c   :  { %1595 = vmatpush.msra.mxu0 %v1483_v13  ;;  %1661 = vmatpush.msra.mxu2 %v6631_v2  ;;  %v1859_v13 = vld [vmem:[%s7631_s5 + $0x8] sm:$0xff] }
 0x19d   :  { %1422 = vmatmul.f32.gmra.mxu3 %v6231_v50  ;;  %v6706_v37 = vsub.f32 %v1860_v31, %v6696_v35  ;;  %v6708_v38 = vand.u32 4294901760, %v1859_v13 }
 0x19e   :  { %v148_v23 = vpop.f32.mrf.mxu0  ;;  %v323_v24 = vpop.f32.mrf.mxu1  ;;  %1599 = vmatpush.msra.mxu0 %v1489_v39  ;;  %1714 = vmatpush.msra.mxu3 %v1713_v21 }
 0x19f   :  { %v194_v25 = vadd.f32 %v193_v12, %v148_v23  ;;  %v228_v26 = vpop.f32.mrf.mxu2  ;;  %v6719_v45 = vsub.f32 %v1859_v13, %v6708_v38  ;;  %v1931_v47 = vand.u32 4294901760, %v6706_v37 }
 0x1a0   :  { %v261_v27 = vpop.f32.mrf.mxu3  ;;  %1603 = vmatpush.msra.mxu0 %v1495_v42  ;;  %v1858_v42 = vld [vmem:[%s7631_s5] sm:$0xff] }
 0x1a1   :  { %v229_v29 = vadd.f32 %v228_v26, %v194_v25  ;;  %1323 = vmatmul.f32.gmra.mxu0 %v6246_v58  ;;  %1500 = vmatmul.f32.vlgmr.msrb.gmra.mxu1 %v6184_v32 }
 0x1a2   :  { %1772 = vmatpush.msrb.mxu1 %v6597_v48 }
 0x1a3   :  { %v262_v33 = vadd.f32 %v261_v27, %v229_v29  ;;  %1534 = vmatmul.f32.vlgmr.msrb.gmra.mxu2 %v6193_v36  ;;  %v1862_v27 = vld [vmem:[%s7631_s5 + $0x20] sm:$0xff] }
 0x1a4   :  { %1807 = vmatpush.msrb.mxu2 %v1693_v0  ;;  %1774 = vmatpush.msrb.mxu1 %v6607_v52  ;;  %v1937_v0 = vand.u32 4294901760, %v6719_v45 }
 0x1a5   :  { %1566 = vmatmul.f32.vlgmr.msrb.gmra.mxu3 %v6207_v18 }
 0x1a6   :  { %v294_v39 = vpop.f32.mrf.mxu0  ;;  %v327_v40 = vpop.f32.mrf.mxu1  ;;  %1842 = vmatpush.msrb.mxu3 %v6597_v48  ;;  %1811 = vmatpush.msrb.mxu2 %v1699_v3  ;;  %v6725_v48 = vand.u32 4294901760, %v1858_v42 }
 0x1a7   :  { %v295_v43 = vadd.f32 %v294_v39, %v256_v22  ;;  %v356_v44 = vpop.f32.mrf.mxu2  ;;  %1776 = vmatpush.msrb.mxu1 %v6619_v51  ;;  %v1863_v22 = vld [vmem:[%s7631_s5 + $0x28] sm:$0xff] }
 0x1a8   :  { %v405_v46 = vpop.f32.mrf.mxu3  ;;  %1844 = vmatpush.msrb.mxu3 %v6607_v52  ;;  %1815 = vmatpush.msrb.mxu2 %v1705_v5  ;;  %v1926_v52 = vsub.f32 %v6694_v34, %v1925_v41  ;;  %v6737_v59 = vsub.f32 %v1858_v42, %v6725_v48  ;;  %v1938_v5 = vsub.f32 %v6719_v45, %v1937_v0  ;;  %v6791_v25 = vand.u32 4294901760, %v1863_v22 }
 0x1a9   :  { %v6727_v54 = vadd.f32 %v323_v24, %v295_v43  ;;  %v406_v57 = vadd.f32 %v405_v46, %v356_v44  ;;  %1451 = vmatmul.f32.vlgmr.msrb.gmra.mxu0 %v6233_v53  ;;  %1504 = vmatmul.f32.gmra.mxu1 %v6231_v50  ;;  %v6789_v24 = vsub.f32 %v1864_v15, %v6779_v20 }
 0x1aa   :  { %1738 = vmatpush.msrb.mxu0 %v6605_v49  ;;  %1778 = vmatpush.msrb.mxu1 %v6631_v2  ;;  %v1932_v49 = vsub.f32 %v6706_v37, %v1931_v47  ;;  %v1943_v62 = vand.u32 4294901760, %v6737_v59  ;;  %v6801_v29 = vsub.f32 %v1863_v22, %v6791_v25 }
 0x1ab   :  { %1539 = vmatmul.f32.gmra.mxu2 %v6246_v58  ;;  %1846 = vmatpush.msrb.mxu3 %v6619_v51  ;;  %v1927_v51 = vand.u32 4294901760, %v1926_v52  ;;  %v2147_v31 = vand.u32 4294901760, %v6789_v24 }
 0x1ac   :  { %1741 = vmatpush.msrb.mxu0 %v6617_v61  ;;  %1819 = vmatpush.msrb.mxu2 %v1711_v8  ;;  %v1933_v7 = vand.u32 4294901760, %v1932_v49 }
 0x1ad   :  { %1572 = vmatmul.f32.gmra.mxu3 %v6260_v60  ;;  %v2148_v49 = vsub.f32 %v6789_v24, %v2147_v31 }
 0x1ae   :  { %v298_v56 = vpop.f32.mrf.mxu0  ;;  %v471_v3 = vpop.f32.mrf.mxu1  ;;  %1744 = vmatpush.msrb.mxu0 %v6629_v1  ;;  %1848 = vmatpush.msrb.mxu3 %v6631_v2  ;;  %v1944_v1 = vsub.f32 %v6737_v59, %v1943_v62  ;;  %v1939_v2 = vand.u32 4294901760, %v1938_v5 }
 0x1af   :  { %v299_v63 = vadd.f32 %v298_v56, %v262_v33  ;;  %v364_v61 = vpop.f32.mrf.mxu2  ;;  %v6806_v33 = vand.u32 4294901760, %v1862_v27  ;;  %v2149_v5 = vand.u32 4294901760, %v2148_v49 }
 0x1b0   :  { %v409_v6 = vpop.f32.mrf.mxu3  ;;  %1747 = vmatpush.msrb.mxu0 %v6643_v4  ;;  %v1865_v4 = vld [vmem:[%s7631_s5 + $0x38] sm:$0xff]  ;;  %v1945_v14 = vand.u32 4294901760, %v1944_v1 }
 0x1b1   :  { %v6756_v8 = vadd.f32 %v327_v40, %v299_v63  ;;  %v410_v9 = vadd.f32 %v409_v6, %v364_v61  ;;  %1459 = vmatmul.f32.gmra.mxu0 %v6276_v55  ;;  %1634 = vmatmul.f32.vlgmr.msra.gmra.mxu1 %v6184_v32  ;;  %v6769_v10 = vand.u32 4294901760, %v1865_v4  ;;  %v6817_v43 = vsub.f32 %v1862_v27, %v6806_v33 }
 0x1b2   :  { %1928 = vmatpush.msra.mxu1 %v1927_v51 }
 0x1b3   :  { %1667 = vmatmul.f32.vlgmr.msra.gmra.mxu2 %v6233_v53  ;;  %v6777_v19 = vsub.f32 %v1865_v4, %v6769_v10  ;;  %v2159_v51 = vand.u32 4294901760, %v6817_v43 }
 0x1b4   :  { %1970 = vmatpush.msra.mxu2 %v6694_v34  ;;  %1934 = vmatpush.msra.mxu1 %v1933_v7 }
 0x1b5   :  { %1716 = vmatmul.f32.vlgmr.msra.gmra.mxu3 %v6184_v32  ;;  %v2141_v26 = vand.u32 4294901760, %v6777_v19 }
 0x1b6   :  { %v439_v11 = vpop.f32.mrf.mxu0  ;;  %v477_v12 = vpop.f32.mrf.mxu1  ;;  %2004 = vmatpush.msra.mxu3 %v6686_v30  ;;  %1973 = vmatpush.msra.mxu2 %v6706_v37  ;;  %v1869_v37 = vld [vmem:[%s7631_s5 + $0x58] sm:$0xff] }
 0x1b7   :  { %v440_v16 = vadd.f32 %v439_v11, %v406_v57  ;;  %v510_v17 = vpop.f32.mrf.mxu2  ;;  %1940 = vmatpush.msra.mxu1 %v1939_v2  ;;  %v2142_v42 = vsub.f32 %v6777_v19, %v2141_v26  ;;  %v2153_v57 = vand.u32 4294901760, %v6801_v29 }
 0x1b8   :  { %v539_v21 = vpop.f32.mrf.mxu3  ;;  %2006 = vmatpush.msra.mxu3 %v6696_v35  ;;  %1976 = vmatpush.msra.mxu2 %v6719_v45  ;;  %v1868_v45 = vld [vmem:[%s7631_s5 + $0x50] sm:$0xff] }
 0x1b9   :  { %v472_v23 = vadd.f32 %v471_v3, %v440_v16  ;;  %1605 = vmatmul.f32.vlgmr.msra.gmra.mxu0 %v6184_v32  ;;  %1638 = vmatmul.f32.gmra.mxu1 %v6231_v50  ;;  %v2143_v3 = vand.u32 4294901760, %v2142_v42  ;;  %v2154_v61 = vsub.f32 %v6801_v29, %v2153_v57  ;;  %v6862_v16 = vand.u32 4294901760, %v1869_v37 }
 0x1ba   :  { %1887 = vmatpush.msra.mxu0 %v6686_v30  ;;  %1946 = vmatpush.msra.mxu1 %v1945_v14 }
 0x1bb   :  { %v511_v28 = vadd.f32 %v510_v17, %v472_v23  ;;  %1675 = vmatmul.f32.gmra.mxu2 %v6276_v55  ;;  %2008 = vmatpush.msra.mxu3 %v6708_v38  ;;  %v2155_v4 = vand.u32 4294901760, %v2154_v61  ;;  %v1867_v17 = vld [vmem:[%s7631_s5 + $0x48] sm:$0xff] }
 0x1bc   :  { %1889 = vmatpush.msra.mxu0 %v6696_v35  ;;  %1979 = vmatpush.msra.mxu2 %v6737_v59  ;;  %v6870_v59 = vsub.f32 %v1869_v37, %v6862_v16  ;;  %v6884_v22 = vand.u32 4294901760, %v1867_v17 }
 0x1bd   :  { %v6808_v13 = vadd.f32 %v539_v21, %v511_v28  ;;  %1720 = vmatmul.f32.gmra.mxu3 %v6231_v50  ;;  %v1866_v28 = vld [vmem:[%s7631_s5 + $0x40] sm:$0xff] }
 0x1be   :  { %v444_v39 = vpop.f32.mrf.mxu0  ;;  %v621_v40 = vpop.f32.mrf.mxu1  ;;  %1891 = vmatpush.msra.mxu0 %v6708_v38  ;;  %2010 = vmatpush.msra.mxu3 %v6725_v48  ;;  %v6895_v42 = vsub.f32 %v1867_v17, %v6884_v22 }
 0x1bf   :  { %v445_v44 = vadd.f32 %v444_v39, %v410_v9  ;;  %v514_v46 = vpop.f32.mrf.mxu2  ;;  %v2160_v9 = vsub.f32 %v6817_v43, %v2159_v51 }
 0x1c0   :  { %v543_v52 = vpop.f32.mrf.mxu3  ;;  %1893 = vmatpush.msra.mxu0 %v6725_v48  ;;  %v2369_v49 = vand.u32 4294901760, %v6895_v42 }
 0x1c1   :  { %v478_v56 = vadd.f32 %v477_v12, %v445_v44  ;;  %1609 = vmatmul.f32.gmra.mxu0 %v6231_v50  ;;  %1782 = vmatmul.f32.vlgmr.msrb.gmra.mxu1 %v6207_v18  ;;  %v2161_v12 = vand.u32 4294901760, %v2160_v9  ;;  %v1872_v9 = vld [vmem:[%s7631_s5 + $0x70] sm:$0xff] }
 0x1c2   :  { %2074 = vmatpush.msrb.mxu1 %v6686_v30 }
 0x1c3   :  { %v515_v63 = vadd.f32 %v514_v46, %v478_v56  ;;  %1821 = vmatmul.f32.vlgmr.msrb.gmra.mxu2 %v6184_v32 }
 0x1c4   :  { %2103 = vmatpush.msrb.mxu2 %v6769_v10  ;;  %2076 = vmatpush.msrb.mxu1 %v6696_v35 }
 0x1c5   :  { %v6834_v6 = vadd.f32 %v543_v52, %v515_v63  ;;  %1850 = vmatmul.f32.vlgmr.msrb.gmra.mxu3 %v6184_v32 }
 0x1c6   :  { %v572_v7 = vpop.f32.mrf.mxu0  ;;  %v625_v30 = vpop.f32.mrf.mxu1  ;;  %2144 = vmatpush.msrb.mxu3 %v2143_v3  ;;  %2105 = vmatpush.msrb.mxu2 %v6779_v20 }
 0x1c7   :  { %v622_v1 = vadd.f32 %v621_v40, %v572_v7  ;;  %v655_v2 = vpop.f32.mrf.mxu2  ;;  %2078 = vmatpush.msrb.mxu1 %v6708_v38 }
 0x1c8   :  { %v687_v35 = vpop.f32.mrf.mxu3  ;;  %2150 = vmatpush.msrb.mxu3 %v2149_v5  ;;  %2107 = vmatpush.msrb.mxu2 %v6791_v25  ;;  %v1873_v5 = vld [vmem:[%s7631_s5 + $0x78] sm:$0xff] }
 0x1c9   :  { %v656_v11 = vadd.f32 %v655_v2, %v622_v1  ;;  %1750 = vmatmul.f32.vlgmr.msrb.gmra.mxu0 %v6193_v36  ;;  %1788 = vmatmul.f32.gmra.mxu1 %v6260_v60  ;;  %v6945_v2 = vand.u32 4294901760, %v1873_v5 }
 0x1ca   :  { %2039 = vmatpush.msrb.mxu0 %v1925_v41  ;;  %2080 = vmatpush.msrb.mxu1 %v6725_v48 }
 0x1cb   :  { %v688_v14 = vadd.f32 %v687_v35, %v656_v11  ;;  %1825 = vmatmul.f32.gmra.mxu2 %v6231_v50  ;;  %2156 = vmatpush.msrb.mxu3 %v2155_v4  ;;  %v6949_v4 = vand.u32 4294901760, %v1872_v9  ;;  %v1871_v35 = vld [vmem:[%s7631_s5 + $0x68] sm:$0xff] }
 0x1cc   :  { %2043 = vmatpush.msrb.mxu0 %v1931_v47  ;;  %2109 = vmatpush.msrb.mxu2 %v6806_v33 }
 0x1cd   :  { %1854 = vmatmul.f32.gmra.mxu3 %v6231_v50 }
 0x1ce   :  { %v580_v38 = vpop.f32.mrf.mxu0  ;;  %v755_v15 = vpop.f32.mrf.mxu1  ;;  %2047 = vmatpush.msrb.mxu0 %v1937_v0  ;;  %2162 = vmatpush.msrb.mxu3 %v2161_v12 }
 0x1cf   :  { %v626_v34 = vadd.f32 %v625_v30, %v580_v38  ;;  %v660_v41 = vpop.f32.mrf.mxu2  ;;  %v6958_v38 = vsub.f32 %v1873_v5, %v6945_v2 }
 0x1d0   :  { %v693_v48 = vpop.f32.mrf.mxu3  ;;  %2051 = vmatpush.msrb.mxu0 %v1943_v62  ;;  %v6872_v62 = vand.u32 4294901760, %v1868_v45 }
 0x1d1   :  { %v661_v47 = vadd.f32 %v660_v41, %v626_v34  ;;  %1755 = vmatmul.f32.gmra.mxu0 %v6246_v58  ;;  %1948 = vmatmul.f32.vlgmr.msra.gmra.mxu1 %v6184_v32  ;;  %v6960_v41 = vand.u32 4294901760, %v1871_v35 }
 0x1d2   :  { %2220 = vmatpush.msra.mxu1 %v6769_v10  ;;  %v6882_v21 = vsub.f32 %v1868_v45, %v6872_v62 }
 0x1d3   :  { %v694_v0 = vadd.f32 %v693_v48, %v661_v47  ;;  %1982 = vmatmul.f32.vlgmr.msra.gmra.mxu2 %v6193_v36  ;;  %v1870_v48 = vld [vmem:[%s7631_s5 + $0x60] sm:$0xff]  ;;  %v6968_v47 = vsub.f32 %v1872_v9, %v6949_v4 }
 0x1d4   :  { %2255 = vmatpush.msra.mxu2 %v2141_v26  ;;  %2222 = vmatpush.msra.mxu1 %v6779_v20  ;;  %v2357_v26 = vand.u32 4294901760, %v6870_v59  ;;  %v6974_v17 = vand.u32 4294901760, %v1870_v48 }
 0x1d5   :  { %2014 = vmatmul.f32.vlgmr.msra.gmra.mxu3 %v6207_v18 }
 0x1d6   :  { %v726_v23 = vpop.f32.mrf.mxu0  ;;  %v759_v27 = vpop.f32.mrf.mxu1  ;;  %2290 = vmatpush.msra.mxu3 %v6769_v10  ;;  %2259 = vmatpush.msra.mxu2 %v2147_v31  ;;  %v2363_v10 = vand.u32 4294901760, %v6882_v21  ;;  %v6901_v31 = vand.u32 4294901760, %v1866_v28 }
 0x1d7   :  { %v727_v39 = vadd.f32 %v726_v23, %v688_v14  ;;  %v788_v40 = vpop.f32.mrf.mxu2  ;;  %2224 = vmatpush.msra.mxu1 %v6791_v25 }
 0x1d8   :  { %v837_v44 = vpop.f32.mrf.mxu3  ;;  %2292 = vmatpush.msra.mxu3 %v6779_v20  ;;  %2263 = vmatpush.msra.mxu2 %v2153_v57  ;;  %v2358_v20 = vsub.f32 %v6870_v59, %v2357_v26  ;;  %v6913_v57 = vsub.f32 %v1866_v28, %v6901_v31  ;;  %v2579_v28 = vand.u32 4294901760, %v6968_v47 }
 0x1d9   :  { %v6903_v46 = vadd.f32 %v755_v15, %v727_v39  ;;  %v838_v52 = vadd.f32 %v837_v44, %v788_v40  ;;  %1899 = vmatmul.f32.vlgmr.msra.gmra.mxu0 %v6233_v53  ;;  %1952 = vmatmul.f32.gmra.mxu1 %v6231_v50 }
 0x1da   :  { %2186 = vmatpush.msra.mxu0 %v6777_v19  ;;  %2226 = vmatpush.msra.mxu1 %v6806_v33  ;;  %v2364_v19 = vsub.f32 %v6882_v21, %v2363_v10  ;;  %v2375_v63 = vand.u32 4294901760, %v6913_v57 }
 0x1db   :  { %1987 = vmatmul.f32.gmra.mxu2 %v6246_v58  ;;  %2294 = vmatpush.msra.mxu3 %v6791_v25  ;;  %v2359_v25 = vand.u32 4294901760, %v2358_v20  ;;  %v6993_v20 = vsub.f32 %v1870_v48, %v6974_v17 }
 0x1dc   :  { %2189 = vmatpush.msra.mxu0 %v6789_v24  ;;  %2267 = vmatpush.msra.mxu2 %v2159_v51  ;;  %v2370_v51 = vsub.f32 %v6895_v42, %v2369_v49  ;;  %v2365_v30 = vand.u32 4294901760, %v2364_v19  ;;  %v2376_v1 = vsub.f32 %v6913_v57, %v2375_v63 }
 0x1dd   :  { %2020 = vmatmul.f32.gmra.mxu3 %v6260_v60  ;;  %v2591_v5 = vand.u32 4294901760, %v6993_v20 }
 0x1de   :  { %v730_v56 = vpop.f32.mrf.mxu0  ;;  %v903_v3 = vpop.f32.mrf.mxu1  ;;  %2192 = vmatpush.msra.mxu0 %v6801_v29  ;;  %2296 = vmatpush.msra.mxu3 %v6806_v33  ;;  %v2377_v14 = vand.u32 4294901760, %v2376_v1 }
 0x1df   :  { %v731_v61 = vadd.f32 %v730_v56, %v694_v0  ;;  %v796_v24 = vpop.f32.mrf.mxu2  ;;  %v2573_v0 = vand.u32 4294901760, %v6958_v38 }
 0x1e0   :  { %v841_v7 = vpop.f32.mrf.mxu3  ;;  %2195 = vmatpush.msra.mxu0 %v6817_v43  ;;  %v2371_v43 = vand.u32 4294901760, %v2370_v51 }
 0x1e1   :  { %v6935_v29 = vadd.f32 %v759_v27, %v731_v61  ;;  %v842_v33 = vadd.f32 %v841_v7, %v796_v24  ;;  %1907 = vmatmul.f32.gmra.mxu0 %v6276_v55  ;;  %2082 = vmatmul.f32.vlgmr.msrb.gmra.mxu1 %v6184_v32  ;;  %v6979_v27 = vsub.f32 %v1871_v35, %v6960_v41 }
 0x1e2   :  { %2360 = vmatpush.msrb.mxu1 %v2359_v25  ;;  %v2580_v61 = vsub.f32 %v6968_v47, %v2579_v28 }
 0x1e3   :  { %2115 = vmatmul.f32.vlgmr.msrb.gmra.mxu2 %v6233_v53 }
 0x1e4   :  { %2402 = vmatpush.msrb.mxu2 %v6870_v59  ;;  %2366 = vmatpush.msrb.mxu1 %v2365_v30 }
 0x1e5   :  { %2164 = vmatmul.f32.vlgmr.msrb.gmra.mxu3 %v6184_v32 }
 0x1e6   :  { %v871_v11 = vpop.f32.mrf.mxu0  ;;  %v909_v12 = vpop.f32.mrf.mxu1  ;;  %2436 = vmatpush.msrb.mxu3 %v6862_v16  ;;  %2405 = vmatpush.msrb.mxu2 %v6882_v21 }
 0x1e7   :  { %v872_v15 = vadd.f32 %v871_v11, %v838_v52  ;;  %v942_v34 = vpop.f32.mrf.mxu2  ;;  %2372 = vmatpush.msrb.mxu1 %v2371_v43  ;;  %v2574_v52 = vsub.f32 %v6958_v38, %v2573_v0  ;;  %v2592_v43 = vsub.f32 %v6993_v20, %v2591_v5 }
 0x1e8   :  { %v971_v37 = vpop.f32.mrf.mxu3  ;;  %2438 = vmatpush.msrb.mxu3 %v6872_v62  ;;  %2408 = vmatpush.msrb.mxu2 %v6895_v42 }
 0x1e9   :  { %v904_v45 = vadd.f32 %v903_v3, %v872_v15  ;;  %2053 = vmatmul.f32.vlgmr.msrb.gmra.mxu0 %v6184_v32  ;;  %2086 = vmatmul.f32.gmra.mxu1 %v6231_v50  ;;  %v2585_v3 = vand.u32 4294901760, %v6979_v27  ;;  %v2575_v51 = vand.u32 4294901760, %v2574_v52 }
 0x1ea   :  { %2319 = vmatpush.msrb.mxu0 %v6862_v16  ;;  %2378 = vmatpush.msrb.mxu1 %v2377_v14 }
 0x1eb   :  { %v943_v23 = vadd.f32 %v942_v34, %v904_v45  ;;  %2123 = vmatmul.f32.gmra.mxu2 %v6276_v55  ;;  %2440 = vmatpush.msrb.mxu3 %v6884_v22  ;;  %v2586_v30 = vsub.f32 %v6979_v27, %v2585_v3 }
 0x1ec   :  { %2321 = vmatpush.msrb.mxu0 %v6872_v62  ;;  %2411 = vmatpush.msrb.mxu2 %v6913_v57 }
 0x1ed   :  { %v6984_v39 = vadd.f32 %v971_v37, %v943_v23  ;;  %2168 = vmatmul.f32.gmra.mxu3 %v6231_v50  ;;  %v2587_v11 = vand.u32 4294901760, %v2586_v30 }
 0x1ee   :  { %v876_v40 = vpop.f32.mrf.mxu0  ;;  %v1069_v44 = vpop.f32.mrf.mxu1  ;;  %2323 = vmatpush.msrb.mxu0 %v6884_v22  ;;  %2442 = vmatpush.msrb.mxu3 %v6901_v31 }
 0x1ef   :  { %v877_v19 = vadd.f32 %v876_v40, %v842_v33  ;;  %v946_v56 = vpop.f32.mrf.mxu2  ;;  %v2581_v33 = vand.u32 4294901760, %v2580_v61 }
 0x1f0   :  { %v975_v25 = vpop.f32.mrf.mxu3  ;;  %2325 = vmatpush.msrb.mxu0 %v6901_v31 }
 0x1f1   :  { %v910_v24 = vadd.f32 %v909_v12, %v877_v19  ;;  %2057 = vmatmul.f32.gmra.mxu0 %v6231_v50  ;;  %2230 = vmatmul.f32.vlgmr.msra.gmra.mxu1 %v6207_v18 }
 0x1f2   :  { %2506 = vmatpush.msra.mxu1 %v6862_v16 }
 0x1f3   :  { %v947_v7 = vadd.f32 %v946_v56, %v910_v24  ;;  %2269 = vmatmul.f32.vlgmr.msra.gmra.mxu2 %v6184_v32 }
 0x1f4   :  { %2535 = vmatpush.msra.mxu2 %v6945_v2  ;;  %2508 = vmatpush.msra.mxu1 %v6872_v62  ;;  %v2593_v62 = vand.u32 4294901760, %v2592_v43 }
 0x1f5   :  { %v7010_v9 = vadd.f32 %v975_v25, %v947_v7  ;;  %2298 = vmatmul.f32.vlgmr.msra.gmra.mxu3 %v6184_v32 }
 0x1f6   :  { %v1020_v1 = vpop.f32.mrf.mxu0  ;;  %v1073_v16 = vpop.f32.mrf.mxu1  ;;  %2537 = vmatpush.msra.mxu2 %v6949_v4  ;;  %2576 = vmatpush.msra.mxu3 %v2575_v51 }
 0x1f7   :  { %v1103_v35 = vpop.f32.mrf.mxu2  ;;  %2510 = vmatpush.msra.mxu1 %v6884_v22  ;;  %v1070_v22 = vadd.f32 %v1069_v44, %v1020_v1 }
 0x1f8   :  { %v1135_v12 = vpop.f32.mrf.mxu3  ;;  %2539 = vmatpush.msra.mxu2 %v6960_v41  ;;  %2582 = vmatpush.msra.mxu3 %v2581_v33 }
 0x1f9   :  { %2198 = vmatmul.f32.vlgmr.msra.gmra.mxu0 %v6193_v36  ;;  %2236 = vmatmul.f32.gmra.mxu1 %v6260_v60  ;;  %v1104_v34 = vadd.f32 %v1103_v35, %v1070_v22 }
 0x1fa   :  { %2471 = vmatpush.msra.mxu0 %v2357_v26  ;;  %2541 = vmatpush.msra.mxu2 %v6974_v17 }
 0x1fb   :  { %2273 = vmatmul.f32.gmra.mxu2 %v6231_v50  ;;  %2588 = vmatpush.msra.mxu3 %v2587_v11  ;;  %v1136_v21 = vadd.f32 %v1135_v12, %v1104_v34 }
 0x1fc   :  { %2475 = vmatpush.msra.mxu0 %v2363_v10  ;;  %2512 = vmatpush.msra.mxu1 %v6901_v31 }
 0x1fd   :  { %2302 = vmatmul.f32.gmra.mxu3 %v6231_v50 }
 0x1fe   :  { %v1028_v14 = vpop.f32.mrf.mxu0  ;;  %v1203_v15 = vpop.f32.mrf.mxu1  ;;  %2594 = vmatpush.msra.mxu3 %v2593_v62  ;;  %2479 = vmatpush.msra.mxu0 %v2369_v49 }
 0x1ff   :  { %v1108_v59 = vpop.f32.mrf.mxu2  ;;  %v1074_v42 = vadd.f32 %v1073_v16, %v1028_v14 }
 0x200   :  { %v1141_v26 = vpop.f32.mrf.mxu3  ;;  %2483 = vmatpush.msra.mxu0 %v2375_v63 }
 0x201   :  { %2203 = vmatmul.f32.gmra.mxu0 %v6246_v58  ;;  %2380 = vmatmul.f32.vlgmr.msrb.gmra.mxu1 %v6184_v32  ;;  %v1109_v48 = vadd.f32 %v1108_v59, %v1074_v42 }
 0x202   :  { %2652 = vmatpush.msrb.mxu1 %v6945_v2 }
 0x203   :  { %2414 = vmatmul.f32.vlgmr.msrb.gmra.mxu2 %v6193_v36 }
 0x204   :  { %2687 = vmatpush.msrb.mxu2 %v2573_v0  ;;  %2654 = vmatpush.msrb.mxu1 %v6949_v4 }
 0x205   :  { %2446 = vmatmul.f32.vlgmr.msrb.gmra.mxu3 %v6207_v18 }
 0x206   :  { %v1174_v10 = vpop.f32.mrf.mxu0  ;;  %v1207_v31 = vpop.f32.mrf.mxu1  ;;  %2691 = vmatpush.msrb.mxu2 %v2579_v28  ;;  %2722 = vmatpush.msrb.mxu3 %v6945_v2 }
 0x207   :  { %v1175_v57 = vadd.f32 %v1174_v10, %v1136_v21  ;;  %v1236_v49 = vpop.f32.mrf.mxu2  ;;  %2656 = vmatpush.msrb.mxu1 %v6960_v41 }
 0x208   :  { %v1285_v63 = vpop.f32.mrf.mxu3  ;;  %2695 = vmatpush.msrb.mxu2 %v2585_v3  ;;  %2724 = vmatpush.msrb.mxu3 %v6949_v4  ;;  %v1142_v4 = vadd.f32 %v1141_v26, %v1109_v48 }
 0x209   :  { %v1204_v37 = vadd.f32 %v1203_v15, %v1175_v57  ;;  %2331 = vmatmul.f32.vlgmr.msrb.gmra.mxu0 %v6233_v53  ;;  %2384 = vmatmul.f32.gmra.mxu1 %v6231_v50  ;;  %v1286_v56 = vadd.f32 %v1285_v63, %v1236_v49  ;;  %v2892_v15 = vsel %vm2738_vm8, %v6756_v8, 0 }
 0x20a   :  { %2618 = vmatpush.msrb.mxu0 %v6958_v38  ;;  %2699 = vmatpush.msrb.mxu2 %v2591_v5  ;;  %v7097_v42 = vand.u32 4294901760, %v2892_v15 }
 0x20b   :  { %v2743_v2 = vsel %vm2738_vm8, %v1204_v37, 0  ;;  %2419 = vmatmul.f32.gmra.mxu2 %v6246_v58  ;;  %2726 = vmatpush.msrb.mxu3 %v6960_v41 }
 0x20c   :  { %v2760_v45 = vand.u32 4294901760, %v2743_v2  ;;  %2621 = vmatpush.msrb.mxu0 %v6968_v47  ;;  %2658 = vmatpush.msrb.mxu1 %v6974_v17 }
 0x20d   :  { %2452 = vmatmul.f32.gmra.mxu3 %v6260_v60 }
 0x20e   :  { %v7059_v0 = vsub.f32 %v2743_v2, %v2760_v45  ;;  %v1178_v38 = vpop.f32.mrf.mxu0  ;;  %v1351_v23 = vpop.f32.mrf.mxu1  ;;  %2728 = vmatpush.msrb.mxu3 %v6974_v17  ;;  %2624 = vmatpush.msrb.mxu0 %v6979_v27 }
 0x20f   :  { %v1179_v28 = vadd.f32 %v1178_v38, %v1142_v4  ;;  %v1244_v40 = vpop.f32.mrf.mxu2 }
 0x210   :  { %v1289_v44 = vpop.f32.mrf.mxu3  ;;  %v2788_v41 = vand.u32 4294901760, %v7059_v0  ;;  %2627 = vmatpush.msrb.mxu0 %v6993_v20 }
 0x211   :  { %v1208_v47 = vadd.f32 %v1207_v31, %v1179_v28  ;;  %2339 = vmatmul.f32.gmra.mxu0 %v6276_v55  ;;  %2514 = vmatmul.f32.vlgmr.msra.gmra.mxu1 %v6184_v32  ;;  %v1290_v1 = vadd.f32 %v1289_v44, %v1244_v40  ;;  %v7107_v31 = vsub.f32 %v2892_v15, %v7097_v42 }
 0x212   :  { %v2789_v52 = vsub.f32 %v7059_v0, %v2788_v41 }
 0x213   :  { %v2895_v19 = vsel %vm2738_vm8, %v1208_v47, 0  ;;  %2547 = vmatmul.f32.vlgmr.msra.gmra.mxu2 %v6233_v53 }
 0x214   :  { %v7070_v17 = vand.u32 4294901760, %v2895_v19  ;;  %2814 = vmatpush.xpose.msra.mxu2 %v7059_v0  ;;  %v2790_v27 = vand.u32 4294901760, %v2789_v52 }
 0x215   :  { %2596 = vmatmul.f32.vlgmr.msra.gmra.mxu3 %v6184_v32 }
 0x216   :  { %2837 = vmatpush.xpose.msra.mxu3 %v2760_v45  ;;  %v1319_v20 = vpop.f32.mrf.mxu0  ;;  %v1357_v3 = vpop.f32.mrf.mxu1  ;;  %2791 = vmatpush.xpose.msra.mxu1 %v2790_v27  ;;  %v7075_v24 = vsub.f32 %v2895_v19, %v7070_v17 }
 0x217   :  { %v1320_v25 = vadd.f32 %v1319_v20, %v1286_v56  ;;  %v1390_v61 = vpop.f32.mrf.mxu2 }
 0x218   :  { %v1419_v51 = vpop.f32.mrf.mxu3  ;;  %v2940_v53 = vand.u32 4294901760, %v7075_v24 }
 0x219   :  { %v1352_v5 = vadd.f32 %v1351_v23, %v1320_v25  ;;  %2485 = vmatmul.f32.vlgmr.msra.gmra.mxu0 %v6184_v32  ;;  %2518 = vmatmul.f32.gmra.mxu1 %v6231_v50 }
 0x21a   :  { %2761 = vmatpush.xpose.msra.mxu0 %v2760_v45  ;;  %v2941_v35 = vsub.f32 %v7075_v24, %v2940_v53 }
 0x21b   :  { %2555 = vmatmul.f32.gmra.mxu2 %v6276_v55  ;;  %v1391_v7 = vadd.f32 %v1390_v61, %v1352_v5  ;;  %v2740_v55 = vsel %vm2738_vm8, %v6727_v54, 0  ;;  %v3044_v61 = vsel %vm2738_vm8, %v6808_v13, 0 }
 0x21c   :  { %v2942_v62 = vand.u32 4294901760, %v2941_v35  ;;  %v7093_v26 = vand.u32 4294901760, %v2740_v55 }
 0x21d   :  { %2600 = vmatmul.f32.gmra.mxu3 %v6231_v50  ;;  %v1420_v11 = vadd.f32 %v1419_v51, %v1391_v7 }
 0x21e   :  { %v1324_v30 = vpop.f32.mrf.mxu0  ;;  %v1501_v33 = vpop.f32.mrf.mxu1 }
 0x21f   :  { %v1394_v16 = vpop.f32.mrf.mxu2  ;;  %v1325_v12 = vadd.f32 %v1324_v30, %v1290_v1  ;;  %v3047_v22 = vsel %vm2738_vm8, %v1420_v11, 0  ;;  %v7137_v30 = vand.u32 4294901760, %v3044_v61 }
 0x220   :  { %v1423_v43 = vpop.f32.mrf.mxu3  ;;  %v7095_v21 = vand.u32 4294901760, %v3047_v22 }
 0x221   :  { %2489 = vmatmul.f32.gmra.mxu0 %v6231_v50  ;;  %2662 = vmatmul.f32.vlgmr.msrb.gmra.mxu1 %v6207_v18  ;;  %v1358_v14 = vadd.f32 %v1357_v3, %v1325_v12 }
 0x222   :  { %2885 = vmatpush.xpose.msrb.mxu1 %v2760_v45  ;;  %v7104_v8 = vsub.f32 %v3047_v22, %v7095_v21  ;;  %v2916_v45 = vand.u32 4294901760, %v7107_v31 }
 0x223   :  { %2701 = vmatmul.f32.vlgmr.msrb.gmra.mxu2 %v6184_v32  ;;  %v1395_v10 = vadd.f32 %v1394_v16, %v1358_v14 }
 0x224   :  { %2913 = vmatpush.xpose.msrb.mxu2 %v7070_v17  ;;  %v2917_v28 = vsub.f32 %v7107_v31, %v2916_v45 }
 0x225   :  { %2730 = vmatmul.f32.vlgmr.msrb.gmra.mxu3 %v6184_v32  ;;  %v2763_v32 = vsub.f32 %v2740_v55, %v7093_v26  ;;  %v1424_v57 = vadd.f32 %v1423_v43, %v1395_v10 }
 0x226   :  { %2943 = vmatpush.xpose.msrb.mxu3 %v2942_v62  ;;  %v1452_v59 = vpop.f32.mrf.mxu0  ;;  %v1505_v18 = vpop.f32.mrf.mxu1  ;;  %v2918_v3 = vand.u32 4294901760, %v2917_v28 }
 0x227   :  { %v1535_v34 = vpop.f32.mrf.mxu2  ;;  %v1502_v49 = vadd.f32 %v1501_v33, %v1452_v59  ;;  %v3199_v4 = vsel %vm2738_vm8, %v1424_v57, 0 }
 0x228   :  { %v1567_v54 = vpop.f32.mrf.mxu3 }
 0x229   :  { %2630 = vmatmul.f32.vlgmr.msrb.gmra.mxu0 %v6193_v36  ;;  %2668 = vmatmul.f32.gmra.mxu1 %v6260_v60  ;;  %v2764_v36 = vand.u32 4294901760, %v2763_v32  ;;  %v3092_v60 = vand.u32 4294901760, %v7104_v8  ;;  %v1536_v0 = vadd.f32 %v1535_v34, %v1502_v49 }
 0x22a   :  { %2863 = vmatpush.xpose.msrb.mxu0 %v2788_v41 }
 0x22b   :  { %2705 = vmatmul.f32.gmra.mxu2 %v6231_v50  ;;  %v2765_v38 = vsub.f32 %v2763_v32, %v2764_v36  ;;  %v3093_v23 = vsub.f32 %v7104_v8, %v3092_v60  ;;  %v1568_v40 = vadd.f32 %v1567_v54, %v1536_v0 }
 0x22d   :  { %2734 = vmatmul.f32.gmra.mxu3 %v6231_v50  ;;  %v7116_v50 = vand.u32 4294901760, %v3199_v4  ;;  %v2766_v41 = vand.u32 4294901760, %v2765_v38  ;;  %v3094_v20 = vand.u32 4294901760, %v3093_v23 }
 0x22e   :  { %v1460_v63 = vpop.f32.mrf.mxu0  ;;  %v1635_v48 = vpop.f32.mrf.mxu1 }
 0x22f   :  { %v1540_v37 = vpop.f32.mrf.mxu2  ;;  %v1506_v47 = vadd.f32 %v1505_v18, %v1460_v63  ;;  %v7124_v27 = vsub.f32 %v3199_v4, %v7116_v50 }
 0x230   :  { %v1573_v2 = vpop.f32.mrf.mxu3 }
 0x231   :  { %2635 = vmatmul.f32.gmra.mxu0 %v6246_v58  ;;  %2793 = vmatmul.f32.vlgmr.msra.gmra.mxu1 %v7093_v26  ;;  %v3244_v51 = vand.u32 4294901760, %v7124_v27 }
 0x232   :  { %2989 = vmatpush.xpose.msra.mxu1 %v7070_v17 }
 0x233   :  { %2817 = vmatmul.f32.vlgmr.msra.gmra.mxu2 %v2763_v32  ;;  %v3245_v43 = vsub.f32 %v7124_v27, %v3244_v51 }
 0x234   :  { %3015 = vmatpush.xpose.msra.mxu2 %v2940_v53  ;;  %v3196_v53 = vsel %vm2738_vm8, %v6834_v6, 0  ;;  %v3067_v6 = vsub.f32 %v3044_v61, %v7137_v30 }
 0x235   :  { %2841 = vmatmul.f32.vlgmr.msra.gmra.mxu3 %v2764_v36  ;;  %v7142_v35 = vand.u32 4294901760, %v3196_v53  ;;  %v3246_v55 = vand.u32 4294901760, %v3245_v43 }
 0x236   :  { %3037 = vmatpush.xpose.msra.mxu3 %v7070_v17  ;;  %v1606_v58 = vpop.f32.mrf.mxu0  ;;  %v1639_v44 = vpop.f32.mrf.mxu1  ;;  %v1541_v17 = vadd.f32 %v1540_v37, %v1506_v47  ;;  %v3068_v18 = vand.u32 4294901760, %v3067_v6 }
 0x237   :  { %v1607_v52 = vadd.f32 %v1606_v58, %v1568_v40  ;;  %v1668_v19 = vpop.f32.mrf.mxu2  ;;  %v7154_v62 = vsub.f32 %v3196_v53, %v7142_v35 }
 0x238   :  { %v1717_v56 = vpop.f32.mrf.mxu3  ;;  %v1574_v33 = vadd.f32 %v1573_v2, %v1541_v17 }
 0x239   :  { %v1636_v25 = vadd.f32 %v1635_v48, %v1607_v52  ;;  %2767 = vmatmul.f32.vlgmr.msra.gmra.mxu0 %v2766_v41  ;;  %2887 = vmatmul.f32.vlgmr.msrb.gmra.mxu1 %v7093_v26  ;;  %v1718_v22 = vadd.f32 %v1717_v56, %v1668_v19  ;;  %v3220_v10 = vand.u32 4294901760, %v7154_v62  ;;  %v3500_v41 = vsel %vm2738_vm8, %v6935_v29, 0 }
 0x23a   :  { %2966 = vmatpush.xpose.msra.mxu0 %v7075_v24  ;;  %3095 = vmatpush.xpose.msrb.mxu1 %v3094_v20 }
 0x23b   :  { %2919 = vmatmul.f32.vlgmr.msrb.gmra.mxu2 %v2918_v3  ;;  %v3351_v5 = vsel %vm2738_vm8, %v1636_v25, 0  ;;  %v3221_v48 = vsub.f32 %v7154_v62, %v3220_v10  ;;  %v7191_v3 = vand.u32 4294901760, %v3500_v41 }
 0x23c   :  { %3118 = vmatpush.xpose.msrb.mxu2 %v7104_v8  ;;  %v7139_v13 = vand.u32 4294901760, %v3351_v5 }
 0x23d   :  { %2945 = vmatmul.f32.vlgmr.msrb.gmra.mxu3 %v7097_v42  ;;  %v3222_v38 = vand.u32 4294901760, %v3221_v48 }
 0x23e   :  { %3141 = vmatpush.xpose.msrb.mxu3 %v7095_v21  ;;  %v1610_v24 = vpop.f32.mrf.mxu0  ;;  %v1783_v7 = vpop.f32.mrf.mxu1  ;;  %v7150_v12 = vsub.f32 %v3351_v5, %v7139_v13 }
 0x23f   :  { %v1676_v1 = vpop.f32.mrf.mxu2  ;;  %v1611_v11 = vadd.f32 %v1610_v24, %v1574_v33 }
 0x240   :  { %v1721_v16 = vpop.f32.mrf.mxu3  ;;  %v3396_v54 = vand.u32 4294901760, %v7150_v12 }
 0x241   :  { %2865 = vmatmul.f32.vlgmr.msrb.gmra.mxu0 %v7093_v26  ;;  %2993 = vmatmul.f32.vlgmr.msra.gmra.mxu1 %v2916_v45  ;;  %v1640_v14 = vadd.f32 %v1639_v44, %v1611_v11 }
 0x242   :  { %3065 = vmatpush.xpose.msrb.mxu0 %v7095_v21  ;;  %3189 = vmatpush.xpose.msra.mxu1 %v7095_v21  ;;  %v3397_v63 = vsub.f32 %v7150_v12, %v3396_v54 }
 0x243   :  { %3017 = vmatmul.f32.vlgmr.msra.gmra.mxu2 %v7097_v42  ;;  %v3503_v32 = vsel %vm2738_vm8, %v1640_v14, 0 }
 0x244   :  { %3217 = vmatpush.xpose.msra.mxu2 %v7116_v50  ;;  %v7165_v49 = vand.u32 4294901760, %v3503_v32  ;;  %v3398_v0 = vand.u32 4294901760, %v3397_v63 }
 0x245   :  { %3039 = vmatmul.f32.vlgmr.msra.gmra.mxu3 %v7097_v42  ;;  %v3069_v42 = vsub.f32 %v3067_v6, %v3068_v18 }
 0x246   :  { %3247 = vmatpush.xpose.msra.mxu3 %v3246_v55  ;;  %v1751_v15 = vpop.f32.mrf.mxu0  ;;  %v1789_v59 = vpop.f32.mrf.mxu1  ;;  %v7173_v45 = vsub.f32 %v3503_v32, %v7165_v49  ;;  %v3652_v32 = vsel %vm2738_vm8, %v6984_v39, 0 }
 0x247   :  { %v1752_v26 = vadd.f32 %v1751_v15, %v1718_v22  ;;  %v1822_v34 = vpop.f32.mrf.mxu2  ;;  %v3070_v37 = vand.u32 4294901760, %v3069_v42 }
 0x248   :  { %v1851_v21 = vpop.f32.mrf.mxu3  ;;  %v3548_v40 = vand.u32 4294901760, %v7173_v45 }
 0x249   :  { %v1784_v57 = vadd.f32 %v1783_v7, %v1752_v26  ;;  %2969 = vmatmul.f32.vlgmr.msra.gmra.mxu0 %v7107_v31  ;;  %3097 = vmatmul.f32.vlgmr.msrb.gmra.mxu1 %v7137_v30 }
 0x24a   :  { %3167 = vmatpush.xpose.msra.mxu0 %v3092_v60  ;;  %3293 = vmatpush.xpose.msrb.mxu1 %v7116_v50  ;;  %v1722_v60 = vadd.f32 %v1721_v16, %v1676_v1  ;;  %v3549_v20 = vsub.f32 %v7173_v45, %v3548_v40 }
 0x24b   :  { %3121 = vmatmul.f32.vlgmr.msrb.gmra.mxu2 %v3067_v6  ;;  %v1823_v36 = vadd.f32 %v1822_v34, %v1784_v57 }
 0x24c   :  { %3319 = vmatpush.xpose.msrb.mxu2 %v3244_v51  ;;  %v3550_v61 = vand.u32 4294901760, %v3549_v20  ;;  %v7203_v51 = vsub.f32 %v3500_v41, %v7191_v3 }
 0x24d   :  { %3145 = vmatmul.f32.vlgmr.msrb.gmra.mxu3 %v3068_v18  ;;  %v1852_v23 = vadd.f32 %v1851_v21, %v1823_v36 }
 0x24e   :  { %3341 = vmatpush.xpose.msrb.mxu3 %v7116_v50  ;;  %v1756_v31 = vpop.f32.mrf.mxu0  ;;  %v1949_v8 = vpop.f32.mrf.mxu1  ;;  %v3348_v50 = vsel %vm2738_vm8, %v6903_v46, 0  ;;  %v3524_v16 = vand.u32 4294901760, %v7203_v51 }
 0x24f   :  { %v1826_v2 = vpop.f32.mrf.mxu2  ;;  %v1757_v28 = vadd.f32 %v1756_v31, %v1722_v60  ;;  %v3655_v58 = vsel %vm2738_vm8, %v1852_v23, 0  ;;  %v7186_v19 = vand.u32 4294901760, %v3348_v50  ;;  %v3674_v31 = vand.u32 4294901760, %v3652_v32 }
 0x250   :  { %v1855_v4 = vpop.f32.mrf.mxu3  ;;  %v7188_v46 = vand.u32 4294901760, %v3655_v58  ;;  %v3525_v22 = vsub.f32 %v7203_v51, %v3524_v16 }
 0x251   :  { %3071 = vmatmul.f32.vlgmr.msrb.gmra.mxu0 %v3070_v37  ;;  %3191 = vmatmul.f32.vlgmr.msra.gmra.mxu1 %v7137_v30  ;;  %v1790_v44 = vadd.f32 %v1789_v59, %v1757_v28  ;;  %v3371_v29 = vsub.f32 %v3348_v50, %v7186_v19 }
 0x252   :  { %3270 = vmatpush.xpose.msrb.mxu0 %v7124_v27  ;;  %3399 = vmatpush.xpose.msra.mxu1 %v3398_v0  ;;  %v7199_v17 = vsub.f32 %v3655_v58, %v7188_v46 }
 0x253   :  { %3223 = vmatmul.f32.vlgmr.msra.gmra.mxu2 %v3222_v38  ;;  %v1827_v25 = vadd.f32 %v1826_v2, %v1790_v44 }
 0x254   :  { %3422 = vmatpush.xpose.msra.mxu2 %v7150_v12  ;;  %v3700_v1 = vand.u32 4294901760, %v7199_v17 }
 0x255   :  { %3249 = vmatmul.f32.vlgmr.msra.gmra.mxu3 %v7142_v35  ;;  %v1856_v5 = vadd.f32 %v1855_v4, %v1827_v25 }
 0x256   :  { %3445 = vmatpush.xpose.msra.mxu3 %v7139_v13  ;;  %v1900_v47 = vpop.f32.mrf.mxu0  ;;  %v1953_v52 = vpop.f32.mrf.mxu1  ;;  %v3701_v55 = vsub.f32 %v7199_v17, %v3700_v1 }
 0x257   :  { %v1983_v27 = vpop.f32.mrf.mxu2  ;;  %v1950_v53 = vadd.f32 %v1949_v8, %v1900_v47  ;;  %v3807_v43 = vsel %vm2738_vm8, %v1856_v5, 0 }
 0x258   :  { %v2015_v56 = vpop.f32.mrf.mxu3  ;;  %v7214_v6 = vand.u32 4294901760, %v3807_v43  ;;  %v3702_v21 = vand.u32 4294901760, %v3701_v55 }
 0x259   :  { %3169 = vmatmul.f32.vlgmr.msra.gmra.mxu0 %v7137_v30  ;;  %3297 = vmatmul.f32.vlgmr.msrb.gmra.mxu1 %v3220_v10  ;;  %v3372_v30 = vand.u32 4294901760, %v3371_v29  ;;  %v1984_v11 = vadd.f32 %v1983_v27, %v1950_v53 }
 0x25a   :  { %3369 = vmatpush.xpose.msra.mxu0 %v7139_v13  ;;  %3493 = vmatpush.xpose.msrb.mxu1 %v7139_v13  ;;  %v7224_v18 = vsub.f32 %v3807_v43, %v7214_v6 }
 0x25b   :  { %3321 = vmatmul.f32.vlgmr.msrb.gmra.mxu2 %v7142_v35 }
 0x25c   :  { %3521 = vmatpush.xpose.msrb.mxu2 %v7165_v49  ;;  %v3852_v57 = vand.u32 4294901760, %v7224_v18 }
 0x25d   :  { %3343 = vmatmul.f32.vlgmr.msrb.gmra.mxu3 %v7142_v35  ;;  %v3373_v35 = vsub.f32 %v3371_v29, %v3372_v30 }
 0x25e   :  { %3551 = vmatpush.xpose.msrb.mxu3 %v3550_v61  ;;  %v1908_v24 = vpop.f32.mrf.mxu0  ;;  %v2083_v7 = vpop.f32.mrf.mxu1  ;;  %v3853_v60 = vsub.f32 %v7224_v18, %v3852_v57 }
 0x25f   :  { %v1988_v33 = vpop.f32.mrf.mxu2  ;;  %v3374_v15 = vand.u32 4294901760, %v3373_v35  ;;  %v1954_v10 = vadd.f32 %v1953_v52, %v1908_v24 }
 0x260   :  { %v2021_v13 = vpop.f32.mrf.mxu3  ;;  %v3854_v38 = vand.u32 4294901760, %v3853_v60 }
 0x261   :  { %3273 = vmatmul.f32.vlgmr.msrb.gmra.mxu0 %v7154_v62  ;;  %3401 = vmatmul.f32.vlgmr.msra.gmra.mxu1 %v7186_v19  ;;  %v2016_v62 = vadd.f32 %v2015_v56, %v1984_v11  ;;  %v1989_v63 = vadd.f32 %v1988_v33, %v1954_v10 }
 0x262   :  { %3471 = vmatpush.xpose.msrb.mxu0 %v3396_v54  ;;  %3597 = vmatpush.xpose.msra.mxu1 %v7165_v49  ;;  %v3526_v54 = vand.u32 4294901760, %v3525_v22 }
 0x263   :  { %3425 = vmatmul.f32.vlgmr.msra.gmra.mxu2 %v3371_v29 }
 0x264   :  { %3623 = vmatpush.xpose.msra.mxu2 %v3548_v40 }
 0x265   :  { %3449 = vmatmul.f32.vlgmr.msra.gmra.mxu3 %v3372_v30 }
 0x266   :  { %3645 = vmatpush.xpose.msra.mxu3 %v7165_v49  ;;  %v2054_v14 = vpop.f32.mrf.mxu0  ;;  %v2087_v12 = vpop.f32.mrf.mxu1  ;;  %v3804_v49 = vsel %vm2738_vm8, %v7010_v9, 0  ;;  %v2022_v9 = vadd.f32 %v2021_v13, %v1989_v63 }
 0x267   :  { %v7221_v59 = vpop.f32.mrf.mxu2  ;;  %v2055_v26 = vadd.f32 %v2054_v14, %v2016_v62  ;;  %v7245_v2 = vand.u32 4294901760, %v3804_v49 }
 0x268   :  { %v7226_v34 = vpop.f32.mrf.mxu3 }
 0x269   :  { %3375 = vmatmul.f32.vlgmr.msra.gmra.mxu0 %v3374_v15  ;;  %3495 = vmatmul.f32.vlgmr.msrb.gmra.mxu1 %v7186_v19  ;;  %v2084_v42 = vadd.f32 %v2083_v7, %v2055_v26  ;;  %v3827_v23 = vsub.f32 %v3804_v49, %v7245_v2 }
 0x26a   :  { %3574 = vmatpush.xpose.msra.mxu0 %v7173_v45  ;;  %3703 = vmatpush.xpose.msrb.mxu1 %v3702_v21  ;;  %v3675_v45 = vsub.f32 %v3652_v32, %v3674_v31 }
 0x26b   :  { %3527 = vmatmul.f32.vlgmr.msrb.gmra.mxu2 %v3526_v54  ;;  %v4084_v39 = vand.u32 4294901760, %v2084_v42  ;;  %v3828_v52 = vand.u32 4294901760, %v3827_v23 }
 0x26c   :  { %3726 = vmatpush.xpose.msrb.mxu2 %v7199_v17  ;;  %v3676_v40 = vand.u32 4294901760, %v3675_v45 }
 0x26d   :  { %3553 = vmatmul.f32.vlgmr.msrb.gmra.mxu3 %v7191_v3  ;;  %v7251_v4 = vsub.f32 %v2084_v42, %v4084_v39  ;;  %v3829_v56 = vsub.f32 %v3827_v23, %v3828_v52 }
 0x26e   :  { %3749 = vmatpush.xpose.msrb.mxu3 %v7188_v46  ;;  %v2058_v48 = vpop.f32.mrf.mxu0  ;;  %v7238_v36 = vpop.f32.mrf.mxu1 }
 0x26f   :  { %v7240_v8 = vpop.f32.mrf.mxu2  ;;  %v2059_v0 = vadd.f32 %v2058_v48, %v2022_v9  ;;  %v4112_v47 = vand.u32 4294901760, %v7251_v4  ;;  %v3830_v5 = vand.u32 4294901760, %v3829_v56  ;;  %v3963_v9 = vlaneseq }
 0x270   :  { %v7242_v37 = vpop.f32.mrf.mxu3 }
 0x271   :  { %3473 = vmatmul.f32.vlgmr.msrb.gmra.mxu0 %v7186_v19  ;;  %3601 = vmatmul.f32.vlgmr.msra.gmra.mxu1 %v3524_v16  ;;  %v2088_v44 = vadd.f32 %v2087_v12, %v2059_v0  ;;  %v3677_v19 = vsub.f32 %v3675_v45, %v3676_v40 }
 0x272   :  { %3673 = vmatpush.xpose.msrb.mxu0 %v7188_v46  ;;  %3797 = vmatpush.xpose.msra.mxu1 %v7188_v46  ;;  %v4113_v46 = vsub.f32 %v7251_v4, %v4112_v47 }
 0x273   :  { %3625 = vmatmul.f32.vlgmr.msra.gmra.mxu2 %v7191_v3  ;;  %v7269_v27 = vand.u32 4294901760, %v2088_v44  ;;  %v3678_v25 = vand.u32 4294901760, %v3677_v19 }
 0x274   :  { %3825 = vmatpush.xpose.msra.mxu2 %v7214_v6 }
 0x275   :  { %3647 = vmatmul.f32.vlgmr.msra.gmra.mxu3 %v7191_v3  ;;  %v7280_v17 = vsub.f32 %v2088_v44, %v7269_v27 }
 0x276   :  { %3855 = vmatpush.xpose.msra.mxu3 %v3854_v38  ;;  %v7256_v28 = vpop.f32.mrf.mxu0  ;;  %v7258_v50 = vpop.f32.mrf.mxu1  ;;  %v3964_v38 = vshrl.u32 %v3963_v9, 7 }
 0x277   :  { %v7260_v58 = vpop.f32.mrf.mxu2  ;;  %v7634_v53 = vand.u32 4294901760, %v7280_v17 }
 0x278   :  { %v7262_v41 = vpop.f32.mrf.mxu3 }
 0x279   :  { %3577 = vmatmul.f32.vlgmr.msra.gmra.mxu0 %v7203_v51  ;;  %3705 = vmatmul.f32.vlgmr.msrb.gmra.mxu1 %v3674_v31  ;;  %v4114_v51 = vand.u32 4294901760, %v4113_v46 }
 0x27a   :  { %3775 = vmatpush.xpose.msra.mxu0 %v3700_v1  ;;  %3901 = vmatpush.xpose.msrb.mxu1 %v7214_v6  ;;  %v4262_v1 = vsub.f32 %v7280_v17, %v7634_v53 }
 0x27b   :  { %3729 = vmatmul.f32.vlgmr.msrb.gmra.mxu2 %v3675_v45 }
 0x27c   :  { %3927 = vmatpush.xpose.msrb.mxu2 %v3852_v57  ;;  %v4263_v13 = vand.u32 4294901760, %v4262_v1 }
 0x27d   :  { %3753 = vmatmul.f32.vlgmr.msrb.gmra.mxu3 %v3676_v40 }
 0x27e   :  { %3949 = vmatpush.xpose.msrb.mxu3 %v7214_v6  ;;  %v7273_v20 = vpop.f32.mrf.mxu0  ;;  %v7275_v3 = vpop.f32.mrf.mxu1 }
 0x27f   :  { %v7277_v29 = vpop.f32.mrf.mxu2 }
 0x280   :  { %v7282_v61 = vpop.f32.mrf.mxu3 }
 0x281   :  { %3679 = vmatmul.f32.vlgmr.msrb.gmra.mxu0 %v3678_v25  ;;  %3799 = vmatmul.f32.vlgmr.msra.gmra.mxu1 %v3674_v31 }
 0x282   :  { %3878 = vmatpush.xpose.msrb.mxu0 %v7224_v18  ;;  %4115 = vmatpush.msra.mxu1 %v4114_v51 }
 0x283   :  { %3831 = vmatmul.f32.vlgmr.msra.gmra.mxu2 %v3830_v5 }
 0x284   :  { %4138 = vmatpush.msra.mxu2 %v7251_v4 }
 0x285   :  { %3857 = vmatmul.f32.vlgmr.msra.gmra.mxu3 %v7245_v2 }
 0x286   :  { %4161 = vmatpush.msra.mxu3 %v4084_v39  ;;  %v7288_v24 = vpop.f32.mrf.mxu0  ;;  %v7290_v7 = vpop.f32.mrf.mxu1 }
 0x287   :  { %v7292_v30 = vpop.f32.mrf.mxu2 }
 0x288   :  { %v7294_v33 = vpop.f32.mrf.mxu3 }
 0x289   :  { %3777 = vmatmul.f32.vlgmr.msra.gmra.mxu0 %v3674_v31  ;;  %3905 = vmatmul.f32.vlgmr.msrb.gmra.mxu1 %v3828_v52 }
 0x28a   :  { %4085 = vmatpush.msra.mxu0 %v4084_v39  ;;  %4209 = vmatpush.msrb.mxu1 %v4084_v39 }
 0x28b   :  { %3929 = vmatmul.f32.vlgmr.msrb.gmra.mxu2 %v7245_v2 }
 0x28c   :  { %4234 = vmatpush.msrb.mxu2 %v7269_v27 }
 0x28d   :  { %3951 = vmatmul.f32.vlgmr.msrb.gmra.mxu3 %v7245_v2 }
 0x28e   :  { %4264 = vmatpush.msrb.mxu3 %v4263_v13  ;;  %v7302_v16 = vpop.f32.mrf.mxu0  ;;  %v7304_v43 = vpop.f32.mrf.mxu1 }
 0x28f   :  { %v7306_v11 = vpop.f32.mrf.mxu2 }
 0x290   :  { %v7308_v35 = vpop.f32.mrf.mxu3 }
 0x291   :  { %3881 = vmatmul.f32.vlgmr.msrb.gmra.mxu0 %v3827_v23  ;;  %v3966_v23 = vand.u32 127, %v3963_v9 }
 0x292   :  { %4187 = vmatpush.msrb.mxu0 %v4112_v47 }
 0x293   :  { %vm7340_vm9 = vcmp.ge.s32.totalorder %v3964_v38, %v3966_v23 }
 0x296   :  { %v7310_v6 = vpop.f32.mrf.mxu0  ;;  %v7312_v55 = vpop.f32.mrf.mxu1 }
 0x297   :  { %v7314_v22 = vpop.f32.mrf.mxu2 }
 0x298   :  { %v7316_v62 = vpop.f32.mrf.mxu3 }
 0x29e   :  { %v7318_v14 = vpop.f32.mrf.mxu0  ;;  %v7320_v12 = vpop.f32.mrf.mxu1 }
 0x29f   :  { %v7322_v15 = vpop.f32.mrf.mxu2 }
 0x2a0   :  { %v7324_v18 = vpop.f32.mrf.mxu3 }
 0x2a6   :  { %v7326_v26 = vpop.f32.mrf.mxu0  ;;  %v7328_v21 = vpop.f32.mrf.mxu1 }
 0x2a7   :  { %v7330_v54 = vpop.f32.mrf.mxu2 }
 0x2a8   :  { %v7332_v10 = vpop.f32.mrf.mxu3 }
 0x2ae   :  { %v7334_v32 = vpop.f32.mrf.mxu0  ;;  %v2794_v57 = vpop.f32.mrf.mxu1 }
 0x2af   :  { %v7336_v42 = vpop.f32.mrf.mxu2 }
 0x2b0   :  { %v7338_v49 = vpop.f32.mrf.mxu3 }
 0x2b1   :  { %7635 = vst [vmem:[#allocation2_spill] sm:$0xff] %v7338_v49 }
 0x2b6   :  { %v2768_v63 = vpop.f32.mrf.mxu0  ;;  %v2888_v48 = vpop.f32.mrf.mxu1 }
 0x2b7   :  { %v2795_v31 = vadd.f32 %v2794_v57, %v2768_v63  ;;  %v2818_v39 = vpop.f32.mrf.mxu2 }
 0x2b8   :  { %v2842_v60 = vpop.f32.mrf.mxu3 }
 0x2b9   :  { %v2819_v2 = vadd.f32 %v2818_v39, %v2795_v31 }
 0x2bb   :  { %v2843_v45 = vadd.f32 %v2842_v60, %v2819_v2 }
 0x2be   :  { %v2866_v4 = vpop.f32.mrf.mxu0  ;;  %v2994_v0 = vpop.f32.mrf.mxu1 }
 0x2bf   :  { %v2867_v40 = vadd.f32 %v2866_v4, %v2843_v45  ;;  %v2920_v44 = vpop.f32.mrf.mxu2 }
 0x2c0   :  { %v2946_v47 = vpop.f32.mrf.mxu3 }
 0x2c1   :  { %v2889_v52 = vadd.f32 %v2888_v48, %v2867_v40  ;;  %v2947_v56 = vadd.f32 %v2946_v47, %v2920_v44 }
 0x2c3   :  { %v3955_v46 = vmul.f32 0.35355338, %v2889_v52 }
 0x2c5   :  { %v7346_v25 = vsel %vm7340_vm9, %v3955_v46, -1e+30 }
 0x2c6   :  { %v2970_v51 = vpop.f32.mrf.mxu0  ;;  %v3098_v5 = vpop.f32.mrf.mxu1  ;;  %v3978_v1 = vsel %vm2738_vm8, %v7346_v25, -inf }
 0x2c7   :  { %v2971_v13 = vadd.f32 %v2970_v51, %v2947_v56  ;;  %v3018_v57 = vpop.f32.mrf.mxu2  ;;  %3979 = vmax.xlane.f32.xlu2 %v3978_v1 }
 0x2c8   :  { %v3040_v63 = vpop.f32.mrf.mxu3 }
 0x2c9   :  { %v2995_v48 = vadd.f32 %v2994_v0, %v2971_v13 }
 0x2cb   :  { %v3019_v31 = vadd.f32 %v3018_v57, %v2995_v48 }
 0x2cd   :  { %v3041_v39 = vadd.f32 %v3040_v63, %v3019_v31 }
 0x2ce   :  { %v3072_v60 = vpop.f32.mrf.mxu0  ;;  %v3192_v4 = vpop.f32.mrf.mxu1 }
 0x2cf   :  { %v3956_v2 = vmul.f32 0.35355338, %v3041_v39  ;;  %v3099_v9 = vadd.f32 %v3098_v5, %v3072_v60  ;;  %v3122_v45 = vpop.f32.mrf.mxu2 }
 0x2d0   :  { %v3146_v38 = vpop.f32.mrf.mxu3 }
 0x2d1   :  { %v3123_v23 = vadd.f32 %v3122_v45, %v3099_v9  ;;  %v7352_v40 = vsel %vm7340_vm9, %v3956_v2, -1e+30 }
 0x2d2   :  { %v3981_v44 = vsel %vm2738_vm8, %v7352_v40, -inf }
 0x2d3   :  { %3982 = vmax.xlane.f32.xlu2 %v3981_v44  ;;  %v3147_v47 = vadd.f32 %v3146_v38, %v3123_v23 }
 0x2d6   :  { %v3170_v52 = vpop.f32.mrf.mxu0  ;;  %v3298_v1 = vpop.f32.mrf.mxu1 }
 0x2d7   :  { %v3171_v0 = vadd.f32 %v3170_v52, %v3147_v47  ;;  %v3224_v46 = vpop.f32.mrf.mxu2 }
 0x2d8   :  { %v3250_v56 = vpop.f32.mrf.mxu3 }
 0x2d9   :  { %v3193_v51 = vadd.f32 %v3192_v4, %v3171_v0  ;;  %v3251_v13 = vadd.f32 %v3250_v56, %v3224_v46 }
 0x2db   :  { %v3957_v5 = vmul.f32 0.35355338, %v3193_v51 }
 0x2dd   :  { %v7358_v57 = vsel %vm7340_vm9, %v3957_v5, -1e+30 }
 0x2de   :  { %v3274_v63 = vpop.f32.mrf.mxu0  ;;  %v3984_v48 = vsel %vm2738_vm8, %v7358_v57, -inf  ;;  %v3402_v45 = vpop.f32.mrf.mxu1 }
 0x2df   :  { %v3275_v31 = vadd.f32 %v3274_v63, %v3251_v13  ;;  %v3322_v39 = vpop.f32.mrf.mxu2  ;;  %3985 = vmax.xlane.f32.xlu0 %v3984_v48 }
 0x2e0   :  { %v3344_v60 = vpop.f32.mrf.mxu3 }
 0x2e1   :  { %v3299_v2 = vadd.f32 %v3298_v1, %v3275_v31 }
 0x2e3   :  { %v3323_v9 = vadd.f32 %v3322_v39, %v3299_v2 }
 0x2e5   :  { %v3345_v38 = vadd.f32 %v3344_v60, %v3323_v9 }
 0x2e6   :  { %v3376_v4 = vpop.f32.mrf.mxu0  ;;  %v3496_v5 = vpop.f32.mrf.mxu1 }
 0x2e7   :  { %v3958_v23 = vmul.f32 0.35355338, %v3345_v38  ;;  %v3403_v44 = vadd.f32 %v3402_v45, %v3376_v4  ;;  %v3426_v47 = vpop.f32.mrf.mxu2 }
 0x2e8   :  { %v3450_v52 = vpop.f32.mrf.mxu3 }
 0x2e9   :  { %v3427_v0 = vadd.f32 %v3426_v47, %v3403_v44  ;;  %v7364_v46 = vsel %vm7340_vm9, %v3958_v23, -1e+30 }
 0x2ea   :  { %v3987_v56 = vsel %vm2738_vm8, %v7364_v46, -inf }
 0x2eb   :  { %3988 = vmax.xlane.f32.xlu1 %v3987_v56  ;;  %v3451_v51 = vadd.f32 %v3450_v52, %v3427_v0 }
 0x2ee   :  { %v3474_v1 = vpop.f32.mrf.mxu0  ;;  %v3602_v4 = vpop.f32.mrf.mxu1 }
 0x2ef   :  { %v3475_v13 = vadd.f32 %v3474_v1, %v3451_v51  ;;  %v3528_v63 = vpop.f32.mrf.mxu2 }
 0x2f0   :  { %v3554_v31 = vpop.f32.mrf.mxu3 }
 0x2f1   :  { %v3497_v48 = vadd.f32 %v3496_v5, %v3475_v13  ;;  %v3555_v60 = vadd.f32 %v3554_v31, %v3528_v63 }
 0x2f3   :  { %v3959_v39 = vmul.f32 0.35355338, %v3497_v48 }
 0x2f5   :  { %v7370_v2 = vsel %vm7340_vm9, %v3959_v39, -1e+30 }
 0x2f6   :  { %v3578_v9 = vpop.f32.mrf.mxu0  ;;  %v3990_v45 = vsel %vm2738_vm8, %v7370_v2, -inf  ;;  %v3706_v13 = vpop.f32.mrf.mxu1 }
 0x2f7   :  { %v3579_v38 = vadd.f32 %v3578_v9, %v3555_v60  ;;  %3991 = vmax.xlane.f32.xlu2 %v3990_v45  ;;  %v3626_v44 = vpop.f32.mrf.mxu2 }
 0x2f8   :  { %v3648_v52 = vpop.f32.mrf.mxu3 }
 0x2f9   :  { %v3603_v23 = vadd.f32 %v3602_v4, %v3579_v38 }
 0x2fb   :  { %v3627_v47 = vadd.f32 %v3626_v44, %v3603_v23 }
 0x2fd   :  { %v3649_v0 = vadd.f32 %v3648_v52, %v3627_v47 }
 0x2fe   :  { %v3680_v1 = vpop.f32.mrf.mxu0  ;;  %v3800_v38 = vpop.f32.mrf.mxu1 }
 0x2ff   :  { %v3960_v56 = vmul.f32 0.35355338, %v3649_v0  ;;  %v3707_v48 = vadd.f32 %v3706_v13, %v3680_v1  ;;  %v3730_v31 = vpop.f32.mrf.mxu2 }
 0x300   :  { %v3754_v63 = vpop.f32.mrf.mxu3 }
 0x301   :  { %v7376_v51 = vsel %vm7340_vm9, %v3960_v56, -1e+30  ;;  %v3731_v60 = vadd.f32 %v3730_v31, %v3707_v48 }
 0x302   :  { %v3993_v5 = vsel %vm2738_vm8, %v7376_v51, -inf }
 0x303   :  { %3994 = vmax.xlane.f32.xlu1 %v3993_v5  ;;  %v3755_v4 = vadd.f32 %v3754_v63, %v3731_v60 }
 0x306   :  { %v3778_v39 = vpop.f32.mrf.mxu0  ;;  %v3906_v1 = vpop.f32.mrf.mxu1 }
 0x307   :  { %v3779_v47 = vadd.f32 %v3778_v39, %v3755_v4  ;;  %v3832_v52 = vpop.f32.mrf.mxu2 }
 0x308   :  { %v3858_v44 = vpop.f32.mrf.mxu3 }
 0x309   :  { %v3859_v56 = vadd.f32 %v3858_v44, %v3832_v52  ;;  %v3801_v5 = vadd.f32 %v3800_v38, %v3779_v47 }
 0x30b   :  { %v3961_v63 = vmul.f32 0.35355338, %v3801_v5 }
 0x30e   :  { %v3882_v0 = vpop.f32.mrf.mxu0 }
 0x30f   :  { %v3883_v53 = vadd.f32 %v3882_v0, %v3859_v56  ;;  %v3930_v39 = vpop.f32.mrf.mxu2 }
 0x310   :  { %v3952_v38 = vpop.f32.mrf.mxu3 }
 0x311   :  { %v3907_v31 = vadd.f32 %v3906_v1, %v3883_v53 }
 0x33a   :  { %v3980_v9 = vpop.xlane.xlu2 %3979 }
 0x33b   :  { %v4002_v45 = vsub.f32 %v7346_v25, %v3980_v9  ;;  %v3931_v9 = vadd.f32 %v3930_v39, %v3907_v31 }
 0x33d   :  { %v4010_v23 = vmul.f32 1.442695, %v4002_v45  ;;  %v3976_v45 = vsel %vm7340_vm9, %v3961_v63, -1e+30 }
 0x33e   :  { %v3996_v4 = vsel %vm2738_vm8, %v3976_v45, -inf }
 0x33f   :  { %6015 = vpow2.f32 %v4010_v23  ;;  %v3953_v23 = vadd.f32 %v3952_v38, %v3931_v9 }
 0x345   :  { %v7381_v49 = vpop.eup %6015 }
 0x346   :  { %v3983_v13 = vpop.xlane.xlu2 %3982  ;;  %v4026_v48 = vsel %vm2738_vm8, %v7381_v49, 0.0 }
 0x347   :  { %v4003_v25 = vsub.f32 %v7352_v40, %v3983_v13  ;;  %4027 = vadd.xlane.f32.xlu0 %v4026_v48  ;;  %v3962_v40 = vmul.f32 0.35355338, %v3953_v23 }
 0x349   :  { %v4012_v60 = vmul.f32 1.442695, %v4003_v25  ;;  %v7396_v56 = vsel %vm7340_vm9, %v3962_v40, -1e+30 }
 0x34a   :  { %v3999_v5 = vsel %vm2738_vm8, %v7396_v56, -inf }
 0x34b   :  { %6017 = vpow2.f32 %v4012_v60 }
 0x34f   :  { %3997 = vmax.xlane.f32.xlu0 %v3996_v4 }
 0x351   :  { %v7389_v44 = vpop.eup %6017 }
 0x352   :  { %v3986_v47 = vpop.xlane.xlu0 %3985  ;;  %v4029_v53 = vsel %vm2738_vm8, %v7389_v44, 0.0 }
 0x353   :  { %v4004_v52 = vsub.f32 %v7358_v57, %v3986_v47  ;;  %4030 = vadd.xlane.f32.xlu2 %v4029_v53 }
 0x355   :  { %v4014_v0 = vmul.f32 1.442695, %v4004_v52 }
 0x357   :  { %6019 = vpow2.f32 %v4014_v0 }
 0x35b   :  { %4000 = vmax.xlane.f32.xlu2 %v3999_v5 }
 0x35d   :  { %v7400_v1 = vpop.eup %6019 }
 0x35e   :  { %v3989_v13 = vpop.xlane.xlu1 %3988  ;;  %v4032_v48 = vsel %vm2738_vm8, %v7400_v1, 0.0 }
 0x35f   :  { %v4005_v31 = vsub.f32 %v7364_v46, %v3989_v13  ;;  %4033 = vadd.xlane.f32.xlu1 %v4032_v48 }
 0x361   :  { %v4016_v57 = vmul.f32 1.442695, %v4005_v31 }
 0x363   :  { %6021 = vpow2.f32 %v4016_v57 }
 0x369   :  { %v7405_v25 = vpop.eup %6021 }
 0x36a   :  { %v3992_v19 = vpop.xlane.xlu2 %3991  ;;  %v4035_v63 = vsel %vm2738_vm8, %v7405_v25, 0.0 }
 0x36b   :  { %v4006_v60 = vsub.f32 %v7370_v2, %v3992_v19  ;;  %4036 = vadd.xlane.f32.xlu0 %v4035_v63  ;;  %v2166_v2 = vadd.f32 %v7226_v34, %v7221_v59 }
 0x36d   :  { %v4018_v39 = vmul.f32 1.442695, %v4006_v60  ;;  %v2200_v40 = vadd.f32 %v7256_v28, %v2166_v2 }
 0x36f   :  { %6023 = vpow2.f32 %v4018_v39  ;;  %v2232_v52 = vadd.f32 %v7238_v36, %v2200_v40 }
 0x371   :  { %v2271_v0 = vadd.f32 %v7260_v58, %v2232_v52 }
 0x373   :  { %v2300_v5 = vadd.f32 %v7262_v41, %v2271_v0  ;;  %v2382_v41 = vadd.f32 %v7275_v3, %v7288_v24  ;;  %v7638_v3 = vand.u32 4294901760, %v7280_v17 }
 0x375   :  { %v7410_v9 = vpop.eup %6023  ;;  %v7428_v31 = vand.u32 4294901760, %v2300_v5 }
 0x376   :  { %v3995_v38 = vpop.xlane.xlu1 %3994  ;;  %v4038_v46 = vsel %vm2738_vm8, %v7410_v9, 0.0 }
 0x377   :  { %v4007_v4 = vsub.f32 %v7376_v51, %v3995_v38  ;;  %4039 = vadd.xlane.f32.xlu1 %v4038_v46  ;;  %v2170_v51 = vadd.f32 %v7242_v37, %v7240_v8  ;;  %v7432_v34 = vsub.f32 %v2300_v5, %v7428_v31 }
 0x379   :  { %v4020_v23 = vmul.f32 1.442695, %v4007_v4  ;;  %v2205_v13 = vadd.f32 %v7273_v20, %v2170_v51  ;;  %v4410_v63 = vand.u32 4294901760, %v7432_v34 }
 0x37b   :  { %6025 = vpow2.f32 %v4020_v23  ;;  %v2238_v57 = vadd.f32 %v7258_v50, %v2205_v13 }
 0x37d   :  { %v2275_v36 = vadd.f32 %v7277_v29, %v2238_v57  ;;  %v2416_v29 = vadd.f32 %v7292_v30, %v2382_v41 }
 0x37f   :  { %v2304_v50 = vadd.f32 %v7282_v61, %v2275_v36  ;;  %v4411_v61 = vsub.f32 %v7432_v34, %v4410_v63  ;;  %v2448_v46 = vadd.f32 %v7294_v33, %v2416_v29  ;;  %v2386_v33 = vadd.f32 %v7290_v7, %v7302_v16 }
 0x381   :  { %v7415_v47 = vpop.eup %6025  ;;  %v4412_v2 = vand.u32 4294901760, %v4411_v61  ;;  %v2487_v52 = vadd.f32 %v7310_v6, %v2448_v46  ;;  %v2602_v46 = vadd.f32 %v7324_v18, %v7322_v15 }
 0x382   :  { %v4041_v53 = vsel %vm2738_vm8, %v7415_v47, 0.0 }
 0x383   :  { %4042 = vadd.xlane.f32.xlu2 %v4041_v53 }
 0x3ba   :  { %v4028_v48 = vpop.xlane.xlu0 %4027 }
 0x3bb   :  { %6027 = vrcp.f32 %v4028_v48 }
 0x3c1   :  { %v6028_v59 = vpop.eup %6027 }
 0x3c2   :  { %v4058_v28 = vmul.f32 %v6028_v59, %v7381_v49  ;;  %v3998_v58 = vpop.xlane.xlu0 %3997 }
 0x3c3   :  { %v4008_v8 = vsub.f32 %v3976_v45, %v3998_v58  ;;  %v7443_v45 = vand.u32 4294901760, %v2304_v50 }
 0x3c4   :  { %v4067_v37 = vsel %vm2738_vm8, %v4058_v28, 0 }
 0x3c5   :  { %v4086_v20 = vand.u32 4294901760, %v4067_v37  ;;  %v4022_v19 = vmul.f32 1.442695, %v4008_v8  ;;  %v7455_v23 = vsub.f32 %v2304_v50, %v7443_v45 }
 0x3c6   :  { %v4031_v60 = vpop.xlane.xlu2 %4030 }
 0x3c7   :  { %v4087_v39 = vsub.f32 %v4067_v37, %v4086_v20  ;;  %6029 = vpow2.f32 %v4022_v19  ;;  %4117 = vmatmul.f32.vlgmr.msra.gmra.mxu1 %v4086_v20  ;;  %v4559_v6 = vand.u32 4294901760, %v7455_v23 }
 0x3c8   :  { %6031 = vrcp.f32 %v4031_v60  ;;  %4310 = vmatpush.msra.mxu1 %v7269_v27 }
 0x3c9   :  { %4141 = vmatmul.f32.vlgmr.msra.gmra.mxu2 %v4087_v39  ;;  %v4088_v49 = vand.u32 4294901760, %v4087_v39  ;;  %v4560_v16 = vsub.f32 %v7455_v23, %v4559_v6 }
 0x3ca   :  { %4336 = vmatpush.msra.mxu2 %v7638_v3 }
 0x3cb   :  { %4165 = vmatmul.f32.vlgmr.msra.gmra.mxu3 %v4088_v49  ;;  %v4089_v24 = vsub.f32 %v4087_v39, %v4088_v49  ;;  %v4561_v41 = vand.u32 4294901760, %v4560_v16 }
 0x3cc   :  { %4358 = vmatpush.msra.mxu3 %v7269_v27 }
 0x3cd   :  { %v7451_v38 = vpop.eup %6029  ;;  %v4090_v30 = vand.u32 4294901760, %v4089_v24 }
 0x3ce   :  { %v6032_v4 = vpop.eup %6031  ;;  %v4001_v53 = vpop.xlane.xlu2 %4000  ;;  %v4044_v40 = vsel %vm2738_vm8, %v7451_v38, 0.0 }
 0x3cf   :  { %v4059_v0 = vmul.f32 %v6032_v4, %v7389_v44  ;;  %v4009_v27 = vsub.f32 %v7396_v56, %v4001_v53  ;;  %4091 = vmatmul.f32.vlgmr.msra.gmra.mxu0 %v4090_v30  ;;  %4211 = vmatmul.f32.vlgmr.msrb.gmra.mxu1 %v4086_v20  ;;  %v2516_v44 = vadd.f32 %v7304_v43, %v2487_v52 }
 0x3d0   :  { %4287 = vmatpush.msra.mxu0 %v7280_v17  ;;  %4413 = vmatpush.msrb.mxu1 %v4412_v2  ;;  %v2421_v56 = vadd.f32 %v7306_v11, %v2386_v33  ;;  %v2637_v53 = vadd.f32 %v7334_v32, %v2602_v46 }
 0x3d1   :  { %v4216_v51 = vsel %vm2738_vm8, %v4059_v0, 0  ;;  %v4024_v5 = vmul.f32 1.442695, %v4009_v27  ;;  %4045 = vadd.xlane.f32.xlu0 %v4044_v40  ;;  %v7470_v7 = vand.u32 4294901760, %v2516_v44 }
 0x3d2   :  { %v4235_v13 = vand.u32 4294901760, %v4216_v51  ;;  %v4034_v48 = vpop.xlane.xlu1 %4033  ;;  %v2454_v59 = vadd.f32 %v7308_v35, %v2421_v56  ;;  %v2670_v2 = vadd.f32 %v7328_v21, %v2637_v53 }
 0x3d3   :  { %6033 = vpow2.f32 %v4024_v5  ;;  %v7484_v37 = vsub.f32 %v2516_v44, %v7470_v7 }
 0x3d4   :  { %v4236_v57 = vsub.f32 %v4216_v51, %v4235_v13  ;;  %6035 = vrcp.f32 %v4034_v48  ;;  %4266 = vmatmul.f32.vlgmr.msrb.gmra.mxu3 %v4235_v13  ;;  %v2491_v28 = vadd.f32 %v7318_v14, %v2454_v59  ;;  %v2707_v27 = vadd.f32 %v7336_v42, %v2670_v2  ;;  %v7639_v48 = vld [vmem:[#allocation2_spill] sm:$0xff] }
 0x3d5   :  { %4459 = vmatpush.msrb.mxu3 %v7428_v31 }
 0x3d6   :  { %v4237_v17 = vand.u32 4294901760, %v4236_v57  ;;  %v2520_v14 = vadd.f32 %v7312_v55, %v2491_v28 }
 0x3d7   :  { %4189 = vmatmul.f32.vlgmr.msrb.gmra.mxu0 %v4086_v20  ;;  %v2598_v20 = vadd.f32 %v7316_v62, %v7314_v22 }
 0x3d8   :  { %4314 = vmatmul.f32.vlgmr.msra.gmra.mxu1 %v4237_v17  ;;  %4383 = vmatpush.msrb.mxu0 %v7428_v31  ;;  %v4238_v43 = vsub.f32 %v4236_v57, %v4237_v17  ;;  %v7497_v22 = vand.u32 4294901760, %v2520_v14 }
 0x3d9   :  { %v7477_v11 = vpop.eup %6033  ;;  %4507 = vmatpush.msra.mxu1 %v7428_v31  ;;  %v2632_v60 = vadd.f32 %v7326_v26, %v2598_v20 }
 0x3da   :  { %v6036_v36 = vpop.eup %6035  ;;  %v4239_v58 = vand.u32 4294901760, %v4238_v43  ;;  %v4047_v8 = vsel %vm2738_vm8, %v7477_v11, 0.0 }
 0x3db   :  { %v4060_v35 = vmul.f32 %v6036_v36, %v7400_v1  ;;  %4048 = vadd.xlane.f32.xlu1 %v4047_v8  ;;  %v4708_v1 = vand.u32 4294901760, %v7484_v37  ;;  %v2664_v55 = vadd.f32 %v7320_v12, %v2632_v60 }
 0x3dc   :  { %4240 = vmatmul.f32.vlgmr.msrb.gmra.mxu2 %v4239_v58  ;;  %4360 = vmatmul.f32.vlgmr.msra.gmra.mxu3 %v4235_v13 }
 0x3dd   :  { %v4365_v31 = vsel %vm2738_vm8, %v4060_v35, 0  ;;  %4436 = vmatpush.msrb.mxu2 %v7432_v34  ;;  %4562 = vmatpush.msra.mxu3 %v4561_v41  ;;  %v4709_v26 = vsub.f32 %v7484_v37, %v4708_v1  ;;  %v7506_v34 = vsub.f32 %v2520_v14, %v7497_v22  ;;  %v2703_v12 = vadd.f32 %v7330_v54, %v2664_v55 }
 0x3de   :  { %v4384_v19 = vand.u32 4294901760, %v4365_v31  ;;  %v4037_v50 = vpop.xlane.xlu0 %4036 }
 0x3df   :  { %6037 = vrcp.f32 %v4037_v50  ;;  %4290 = vmatmul.f32.vlgmr.msra.gmra.mxu0 %v4236_v57  ;;  %v4710_v61 = vand.u32 4294901760, %v4709_v26  ;;  %v4857_v4 = vand.u32 4294901760, %v7506_v34 }
 0x3e0   :  { %v4385_v39 = vsub.f32 %v4365_v31, %v4384_v19  ;;  %4415 = vmatmul.f32.vlgmr.msrb.gmra.mxu1 %v4384_v19  ;;  %4485 = vmatpush.msra.mxu0 %v4410_v63  ;;  %v5258_v31 = vld [vmem:[%s7632_s6] sm:$0xff] }
 0x3e1   :  { %4608 = vmatpush.msrb.mxu1 %v7443_v45  ;;  %v4858_v52 = vsub.f32 %v7506_v34, %v4857_v4  ;;  %v5283_v50 = vand.u32 4294901760, %v5258_v31 }
 0x3e2   :  { %v4386_v62 = vand.u32 4294901760, %v4385_v39 }
 0x3e3   :  { %v4859_v33 = vand.u32 4294901760, %v4858_v52  ;;  %v7548_v60 = vsub.f32 %v5258_v31, %v5283_v50 }
 0x3e4   :  { %4338 = vmatmul.f32.vlgmr.msra.gmra.mxu2 %v4235_v13  ;;  %4463 = vmatmul.f32.vlgmr.msrb.gmra.mxu3 %v4386_v62  ;;  %v4387_v29 = vsub.f32 %v4385_v39, %v4386_v62 }
 0x3e5   :  { %v6038_v49 = vpop.eup %6037  ;;  %4532 = vmatpush.msra.mxu2 %v7443_v45  ;;  %4656 = vmatpush.msrb.mxu3 %v7443_v45 }
 0x3e6   :  { %v4061_v63 = vmul.f32 %v6038_v49, %v7405_v25  ;;  %v4388_v3 = vand.u32 4294901760, %v4387_v29  ;;  %v2732_v25 = vadd.f32 %v7332_v10, %v2703_v12 }
 0x3e8   :  { %v4514_v24 = vsel %vm2738_vm8, %v4061_v63, 0  ;;  %4389 = vmatmul.f32.vlgmr.msrb.gmra.mxu0 %v4388_v3  ;;  %4509 = vmatmul.f32.vlgmr.msra.gmra.mxu1 %v4384_v19  ;;  %v4978_v18 = vand.u32 4294901760, %v2732_v25 }
 0x3e9   :  { %v4533_v30 = vand.u32 4294901760, %v4514_v24  ;;  %4585 = vmatpush.msrb.mxu0 %v7455_v23  ;;  %4711 = vmatpush.msra.mxu1 %v4710_v61 }
 0x3ea   :  { %v4040_v45 = vpop.xlane.xlu1 %4039  ;;  %v5005_v0 = vsub.f32 %v2732_v25, %v4978_v18 }
 0x3eb   :  { %v4534_v54 = vsub.f32 %v4514_v24, %v4533_v30  ;;  %6039 = vrcp.f32 %v4040_v45  ;;  %v5259_v24 = vld [vmem:[%s7632_s6 + $0x8] sm:$0xff] }
 0x3ec   :  { %4439 = vmatmul.f32.vlgmr.msrb.gmra.mxu2 %v4385_v39  ;;  %4564 = vmatmul.f32.vlgmr.msra.gmra.mxu3 %v4533_v30  ;;  %v5006_v13 = vand.u32 4294901760, %v5005_v0  ;;  %v7560_v45 = vand.u32 4294901760, %v5259_v24 }
 0x3ed   :  { %4634 = vmatpush.msrb.mxu2 %v4559_v6  ;;  %4757 = vmatpush.msra.mxu3 %v7470_v7  ;;  %v4535_v15 = vand.u32 4294901760, %v4534_v54  ;;  %v2736_v6 = vadd.f32 %v7639_v48, %v2707_v27 }
 0x3ee   :  { %v5007_v57 = vsub.f32 %v5005_v0, %v5006_v13  ;;  %v7565_v2 = vsub.f32 %v5259_v24, %v7560_v45 }
 0x3ef   :  { %v4536_v40 = vsub.f32 %v4534_v54, %v4535_v15 }
 0x3f0   :  { %4487 = vmatmul.f32.vlgmr.msra.gmra.mxu0 %v4384_v19  ;;  %4612 = vmatmul.f32.vlgmr.msrb.gmra.mxu1 %v4535_v15  ;;  %v5008_v43 = vand.u32 4294901760, %v5007_v57 }
 0x3f1   :  { %v6040_v10 = vpop.eup %6039  ;;  %4681 = vmatpush.msra.mxu0 %v7470_v7  ;;  %4805 = vmatpush.msrb.mxu1 %v7470_v7  ;;  %v4537_v32 = vand.u32 4294901760, %v4536_v40 }
 0x3f2   :  { %v4062_v23 = vmul.f32 %v6040_v10, %v7410_v9  ;;  %v7532_v9 = vand.u32 4294901760, %v2736_v6 }
 0x3f4   :  { %v4663_v51 = vsel %vm2738_vm8, %v4062_v23, 0  ;;  %4538 = vmatmul.f32.vlgmr.msra.gmra.mxu2 %v4537_v32  ;;  %4658 = vmatmul.f32.vlgmr.msrb.gmra.mxu3 %v4533_v30  ;;  %v7538_v59 = vsub.f32 %v2736_v6, %v7532_v9 }
 0x3f5   :  { %v4682_v21 = vand.u32 4294901760, %v4663_v51  ;;  %4734 = vmatpush.msra.mxu2 %v7484_v37  ;;  %4860 = vmatpush.msrb.mxu3 %v4859_v33 }
 0x3f6   :  { %v4043_v5 = vpop.xlane.xlu2 %4042  ;;  %v5155_v58 = vand.u32 4294901760, %v7538_v59 }
 0x3f7   :  { %v4683_v44 = vsub.f32 %v4663_v51, %v4682_v21  ;;  %6041 = vrcp.f32 %v4043_v5 }
 0x3f8   :  { %4588 = vmatmul.f32.vlgmr.msrb.gmra.mxu0 %v4534_v54  ;;  %4713 = vmatmul.f32.vlgmr.msra.gmra.mxu1 %v4682_v21  ;;  %v5156_v35 = vsub.f32 %v7538_v59, %v5155_v58 }
 0x3f9   :  { %4783 = vmatpush.msrb.mxu0 %v4708_v1  ;;  %4906 = vmatpush.msra.mxu1 %v7497_v22  ;;  %v4684_v42 = vand.u32 4294901760, %v4683_v44 }
 0x3fa   :  { %v5157_v20 = vand.u32 4294901760, %v5156_v35 }
 0x3fb   :  { %v4685_v56 = vsub.f32 %v4683_v44, %v4684_v42 }
 0x3fc   :  { %4636 = vmatmul.f32.vlgmr.msrb.gmra.mxu2 %v4533_v30  ;;  %4761 = vmatmul.f32.vlgmr.msra.gmra.mxu3 %v4684_v42 }
 0x3fd   :  { %v6042_v17 = vpop.eup %6041  ;;  %4830 = vmatpush.msrb.mxu2 %v7497_v22  ;;  %4954 = vmatpush.msra.mxu3 %v7497_v22  ;;  %v4686_v7 = vand.u32 4294901760, %v4685_v56 }
 0x3fe   :  { %v4063_v16 = vmul.f32 %v6042_v17, %v7415_v47 }
 0x400   :  { %v4812_v36 = vsel %vm2738_vm8, %v4063_v16, 0  ;;  %4687 = vmatmul.f32.vlgmr.msra.gmra.mxu0 %v4686_v7  ;;  %4807 = vmatmul.f32.vlgmr.msrb.gmra.mxu1 %v4682_v21 }
 0x401   :  { %v4831_v28 = vand.u32 4294901760, %v4812_v36  ;;  %4883 = vmatpush.msra.mxu0 %v7506_v34  ;;  %5009 = vmatpush.msrb.mxu1 %v5008_v43  ;;  %v5319_v34 = vand.u32 4294901760, %v7548_v60 }
 0x403   :  { %v4832_v8 = vsub.f32 %v4812_v36, %v4831_v28 }
 0x404   :  { %4737 = vmatmul.f32.vlgmr.msra.gmra.mxu2 %v4683_v44  ;;  %4862 = vmatmul.f32.vlgmr.msrb.gmra.mxu3 %v4831_v28 }
 0x405   :  { %4932 = vmatpush.msra.mxu2 %v4857_v4  ;;  %5055 = vmatpush.msrb.mxu3 %v4978_v18  ;;  %v4833_v47 = vand.u32 4294901760, %v4832_v8 }
 0x407   :  { %v4834_v37 = vsub.f32 %v4832_v8, %v4833_v47 }
 0x408   :  { %4785 = vmatmul.f32.vlgmr.msrb.gmra.mxu0 %v4682_v21  ;;  %4910 = vmatmul.f32.vlgmr.msra.gmra.mxu1 %v4833_v47 }
 0x409   :  { %4979 = vmatpush.msrb.mxu0 %v4978_v18  ;;  %5103 = vmatpush.msra.mxu1 %v4978_v18  ;;  %v4835_v41 = vand.u32 4294901760, %v4834_v37 }
 0x40c   :  { %4836 = vmatmul.f32.vlgmr.msrb.gmra.mxu2 %v4835_v41  ;;  %4956 = vmatmul.f32.vlgmr.msra.gmra.mxu3 %v4831_v28 }
 0x40d   :  { %5032 = vmatpush.msrb.mxu2 %v5005_v0  ;;  %5158 = vmatpush.msra.mxu3 %v5157_v20 }
 0x410   :  { %4886 = vmatmul.f32.vlgmr.msra.gmra.mxu0 %v4832_v8 }
 0x411   :  { %5081 = vmatpush.msra.mxu0 %v5006_v13 }
 0x414   :  { %4934 = vmatmul.f32.vlgmr.msra.gmra.mxu2 %v4831_v28 }
 0x415   :  { %5128 = vmatpush.msra.mxu2 %v7532_v9 }
 0x444   :  { %v4046_v14 = vpop.xlane.xlu0 %4045  ;;  %v4118_v19 = vpop.f32.mrf.mxu1 }
 0x445   :  { %6043 = vrcp.f32 %v4046_v14  ;;  %v5260_v14 = vld [vmem:[%s7632_s6 + $0x10] sm:$0xff] }
 0x44b   :  { %v6044_v1 = vpop.eup %6043 }
 0x44c   :  { %v4064_v39 = vmul.f32 %v6044_v1, %v7451_v38  ;;  %v4092_v22 = vpop.f32.mrf.mxu0  ;;  %v4142_v55 = vpop.f32.mrf.mxu2  ;;  %v5320_v38 = vsub.f32 %v7548_v60, %v5319_v34  ;;  %v5649_v1 = vand.u32 4294901760, %v5260_v14 }
 0x44d   :  { %v4119_v62 = vadd.f32 %v4118_v19, %v4092_v22  ;;  %v4212_v12 = vpop.f32.mrf.mxu1 }
 0x44e   :  { %v4961_v26 = vsel %vm2738_vm8, %v4064_v39, 0  ;;  %v4166_v29 = vpop.f32.mrf.mxu3  ;;  %v4049_v49 = vpop.xlane.xlu1 %4048  ;;  %v5321_v18 = vand.u32 4294901760, %v5320_v38 }
 0x44f   :  { %v4980_v63 = vand.u32 4294901760, %v4961_v26  ;;  %v4143_v3 = vadd.f32 %v4142_v55, %v4119_v62  ;;  %6045 = vrcp.f32 %v4049_v49  ;;  %v7592_v55 = vsub.f32 %v5260_v14, %v5649_v1 }
 0x451   :  { %v4981_v61 = vsub.f32 %v4961_v26, %v4980_v63  ;;  %5011 = vmatmul.f32.vlgmr.msrb.gmra.mxu1 %v4980_v63  ;;  %v4167_v46 = vadd.f32 %v4166_v29, %v4143_v3  ;;  %v5685_v49 = vand.u32 4294901760, %v7592_v55 }
 0x452   :  { %5204 = vmatpush.msrb.mxu1 %v7532_v9 }
 0x453   :  { %5035 = vmatmul.f32.vlgmr.msrb.gmra.mxu2 %v4981_v61  ;;  %v4982_v30 = vand.u32 4294901760, %v4981_v61 }
 0x454   :  { %5230 = vmatpush.msrb.mxu2 %v5155_v58  ;;  %v4190_v4 = vpop.f32.mrf.mxu0 }
 0x455   :  { %v6046_v25 = vpop.eup %6045  ;;  %5059 = vmatmul.f32.vlgmr.msrb.gmra.mxu3 %v4982_v30  ;;  %v4191_v53 = vadd.f32 %v4190_v4, %v4167_v46  ;;  %v4983_v54 = vsub.f32 %v4981_v61, %v4982_v30  ;;  %v4315_v0 = vpop.f32.mrf.mxu1 }
 0x456   :  { %v4065_v15 = vmul.f32 %v6046_v25, %v7477_v11  ;;  %5252 = vmatpush.msrb.mxu3 %v7532_v9  ;;  %v5502_v11 = vand.u32 4294901760, %v7565_v2 }
 0x457   :  { %v4267_v40 = vpop.f32.mrf.mxu3  ;;  %v4984_v52 = vand.u32 4294901760, %v4983_v54  ;;  %v4213_v32 = vadd.f32 %v4212_v12, %v4191_v53  ;;  %v5686_v12 = vsub.f32 %v7592_v55, %v5685_v49 }
 0x458   :  { %v5110_v10 = vsel %vm2738_vm8, %v4065_v15, 0  ;;  %v5503_v5 = vsub.f32 %v7565_v2, %v5502_v11 }
 0x459   :  { %v5129_v23 = vand.u32 4294901760, %v5110_v10  ;;  %4985 = vmatmul.f32.vlgmr.msrb.gmra.mxu0 %v4984_v52  ;;  %5105 = vmatmul.f32.vlgmr.msra.gmra.mxu1 %v4980_v63  ;;  %v5263_v33 = vsel %vm2738_vm8, %v4213_v32, 0  ;;  %v5687_v46 = vand.u32 4294901760, %v5686_v12 }
 0x45a   :  { %5181 = vmatpush.msrb.mxu0 %v7538_v59  ;;  %5322 = vmatpush.msra.mxu1 %v5321_v18  ;;  %v7574_v13 = vand.u32 4294901760, %v5263_v33  ;;  %v5504_v57 = vand.u32 4294901760, %v5503_v5 }
 0x45b   :  { %v5130_v27 = vsub.f32 %v5110_v10, %v5129_v23 }
 0x45c   :  { %v4291_v51 = vpop.f32.mrf.mxu0  ;;  %v5286_v17 = vsub.f32 %v5263_v33, %v7574_v13 }
 0x45d   :  { %5160 = vmatmul.f32.vlgmr.msra.gmra.mxu3 %v5129_v23  ;;  %v5131_v21 = vand.u32 4294901760, %v5130_v27  ;;  %v4416_v7 = vpop.f32.mrf.mxu1 }
 0x45e   :  { %5377 = vmatpush.msra.mxu3 %v5283_v50  ;;  %v5287_v43 = vand.u32 4294901760, %v5286_v17 }
 0x45f   :  { %v4241_v48 = vpop.f32.mrf.mxu2  ;;  %v4361_v6 = vpop.f32.mrf.mxu3  ;;  %v5132_v44 = vsub.f32 %v5130_v27, %v5131_v21 }
 0x460   :  { %v4268_v42 = vadd.f32 %v4267_v40, %v4241_v48  ;;  %v5288_v47 = vsub.f32 %v5286_v17, %v5287_v43 }
 0x461   :  { %5083 = vmatmul.f32.vlgmr.msra.gmra.mxu0 %v4980_v63  ;;  %5208 = vmatmul.f32.vlgmr.msrb.gmra.mxu1 %v5131_v21  ;;  %v5133_v9 = vand.u32 4294901760, %v5132_v44 }
 0x462   :  { %v4292_v56 = vadd.f32 %v4291_v51, %v4268_v42  ;;  %5284 = vmatpush.msra.mxu0 %v5283_v50  ;;  %5435 = vmatpush.msrb.mxu1 %v5283_v50  ;;  %v5289_v19 = vand.u32 4294901760, %v5288_v47 }
 0x463   :  { %5134 = vmatmul.f32.vlgmr.msra.gmra.mxu2 %v5133_v9 }
 0x464   :  { %5349 = vmatpush.msra.mxu2 %v7548_v60  ;;  %v4316_v59 = vadd.f32 %v4315_v0, %v4292_v56 }
 0x465   :  { %5254 = vmatmul.f32.vlgmr.msrb.gmra.mxu3 %v5129_v23  ;;  %v4390_v16 = vpop.f32.mrf.mxu0  ;;  %v4510_v35 = vpop.f32.mrf.mxu1 }
 0x466   :  { %5505 = vmatpush.msrb.mxu3 %v5504_v57  ;;  %v4417_v31 = vadd.f32 %v4416_v7, %v4390_v16 }
 0x467   :  { %v4339_v36 = vpop.f32.mrf.mxu2  ;;  %v4464_v28 = vpop.f32.mrf.mxu3 }
 0x468   :  { %v4340_v58 = vadd.f32 %v4339_v36, %v4316_v59 }
 0x469   :  { %5184 = vmatmul.f32.vlgmr.msrb.gmra.mxu0 %v5130_v27  ;;  %5324 = vmatmul.f32.vlgmr.msra.gmra.mxu1 %v7574_v13 }
 0x46a   :  { %v4362_v8 = vadd.f32 %v4361_v6, %v4340_v58  ;;  %5409 = vmatpush.msrb.mxu0 %v5319_v34  ;;  %5560 = vmatpush.msra.mxu1 %v7560_v45 }
 0x46b   :  { %5232 = vmatmul.f32.vlgmr.msrb.gmra.mxu2 %v5129_v23 }
 0x46c   :  { %v5266_v37 = vsel %vm2738_vm8, %v4362_v8, 0  ;;  %5467 = vmatpush.msrb.mxu2 %v7560_v45 }
 0x46d   :  { %v7584_v41 = vand.u32 4294901760, %v5266_v37  ;;  %5381 = vmatmul.f32.vlgmr.msra.gmra.mxu3 %v5287_v43  ;;  %v4488_v20 = vpop.f32.mrf.mxu0  ;;  %v4613_v38 = vpop.f32.mrf.mxu1 }
 0x46e   :  { %5618 = vmatpush.msra.mxu3 %v7560_v45 }
 0x46f   :  { %v5294_v50 = vsub.f32 %v5266_v37, %v7584_v41  ;;  %v4440_v60 = vpop.f32.mrf.mxu2  ;;  %v4565_v22 = vpop.f32.mrf.mxu3 }
 0x470   :  { %v4441_v39 = vadd.f32 %v4440_v60, %v4417_v31 }
 0x471   :  { %5290 = vmatmul.f32.vlgmr.msra.gmra.mxu0 %v5289_v19  ;;  %5328 = vmatmul.f32.gmra.mxu1 %v7584_v41  ;;  %v5295_v62 = vand.u32 4294901760, %v5294_v50 }
 0x472   :  { %v4465_v26 = vadd.f32 %v4464_v28, %v4441_v39  ;;  %5532 = vmatpush.msra.mxu0 %v7565_v2 }
 0x473   :  { %5352 = vmatmul.f32.vlgmr.msra.gmra.mxu2 %v5286_v17  ;;  %v5296_v29 = vsub.f32 %v5294_v50, %v5295_v62 }
 0x474   :  { %v4489_v34 = vadd.f32 %v4488_v20, %v4465_v26  ;;  %5592 = vmatpush.msra.mxu2 %v5502_v11  ;;  %v5261_v26 = vld [vmem:[%s7632_s6 + $0x18] sm:$0xff] }
 0x475   :  { %5387 = vmatmul.f32.gmra.mxu3 %v5295_v62  ;;  %v4589_v63 = vpop.f32.mrf.mxu0  ;;  %v5297_v3 = vand.u32 4294901760, %v5296_v29  ;;  %v4714_v32 = vpop.f32.mrf.mxu1  ;;  %v5832_v29 = vand.u32 4294901760, %v5261_v26 }
 0x476   :  { %v4511_v61 = vadd.f32 %v4510_v35, %v4489_v34 }
 0x477   :  { %v4539_v24 = vpop.f32.mrf.mxu2  ;;  %v4659_v54 = vpop.f32.mrf.mxu3 }
 0x478   :  { %v5446_v30 = vsel %vm2738_vm8, %v4511_v61, 0  ;;  %v4566_v45 = vadd.f32 %v4565_v22, %v4539_v24 }
 0x479   :  { %v5468_v4 = vand.u32 4294901760, %v5446_v30  ;;  %5298 = vmatmul.f32.gmra.mxu0 %v5297_v3  ;;  %5437 = vmatmul.f32.vlgmr.msrb.gmra.mxu1 %v7574_v13 }
 0x47a   :  { %v4590_v25 = vadd.f32 %v4589_v63, %v4566_v45  ;;  %5688 = vmatpush.msrb.mxu1 %v5687_v46 }
 0x47b   :  { %v5469_v53 = vsub.f32 %v5446_v30, %v5468_v4  ;;  %5357 = vmatmul.f32.gmra.mxu2 %v5294_v50 }
 0x47c   :  { %v4614_v2 = vadd.f32 %v4613_v38, %v4590_v25 }
 0x47d   :  { %v5470_v15 = vand.u32 4294901760, %v5469_v53  ;;  %5507 = vmatmul.f32.vlgmr.msrb.gmra.mxu3 %v5468_v4  ;;  %v4688_v18 = vpop.f32.mrf.mxu0  ;;  %v4808_v42 = vpop.f32.mrf.mxu1 }
 0x47e   :  { %5743 = vmatpush.msrb.mxu3 %v5649_v1  ;;  %v4715_v51 = vadd.f32 %v4714_v32, %v4688_v18 }
 0x47f   :  { %v4637_v40 = vpop.f32.mrf.mxu2  ;;  %v5471_v52 = vsub.f32 %v5469_v53, %v5470_v15  ;;  %v4762_v33 = vpop.f32.mrf.mxu3 }
 0x480   :  { %v4638_v10 = vadd.f32 %v4637_v40, %v4614_v2 }
 0x481   :  { %5411 = vmatmul.f32.vlgmr.msrb.gmra.mxu0 %v7574_v13  ;;  %5441 = vmatmul.f32.gmra.mxu1 %v7584_v41  ;;  %v5472_v23 = vand.u32 4294901760, %v5471_v52 }
 0x482   :  { %v4660_v0 = vadd.f32 %v4659_v54, %v4638_v10  ;;  %5650 = vmatpush.msrb.mxu0 %v5649_v1 }
 0x483   :  { %5473 = vmatmul.f32.vlgmr.msrb.gmra.mxu2 %v5472_v23 }
 0x484   :  { %v5449_v11 = vsel %vm2738_vm8, %v4660_v0, 0  ;;  %5715 = vmatpush.msrb.mxu2 %v7592_v55 }
 0x485   :  { %v5476_v27 = vand.u32 4294901760, %v5449_v11  ;;  %v4786_v5 = vpop.f32.mrf.mxu0  ;;  %v4911_v47 = vpop.f32.mrf.mxu1 }
 0x487   :  { %v5477_v21 = vsub.f32 %v5449_v11, %v5476_v27  ;;  %v4738_v48 = vpop.f32.mrf.mxu2  ;;  %5511 = vmatmul.f32.gmra.mxu3 %v5476_v27  ;;  %v4863_v7 = vpop.f32.mrf.mxu3 }
 0x488   :  { %v4739_v6 = vadd.f32 %v4738_v48, %v4715_v51 }
 0x489   :  { %5415 = vmatmul.f32.gmra.mxu0 %v7584_v41  ;;  %5564 = vmatmul.f32.vlgmr.msra.gmra.mxu1 %v5470_v15  ;;  %v5478_v13 = vand.u32 4294901760, %v5477_v21 }
 0x48a   :  { %v4763_v44 = vadd.f32 %v4762_v33, %v4739_v6  ;;  %5801 = vmatpush.msra.mxu1 %v5649_v1 }
 0x48b   :  { %v5479_v9 = vsub.f32 %v5477_v21, %v5478_v13 }
 0x48c   :  { %v4787_v56 = vadd.f32 %v4786_v5, %v4763_v44 }
 0x48d   :  { %v5480_v57 = vand.u32 4294901760, %v5479_v9  ;;  %v4887_v28 = vpop.f32.mrf.mxu0 }
 0x48e   :  { %v4809_v17 = vadd.f32 %v4808_v42, %v4787_v56 }
 0x48f   :  { %v4837_v16 = vpop.f32.mrf.mxu2  ;;  %5481 = vmatmul.f32.gmra.mxu2 %v5480_v57  ;;  %5620 = vmatmul.f32.vlgmr.msra.gmra.mxu3 %v5468_v4  ;;  %v4957_v31 = vpop.f32.mrf.mxu3 }
 0x490   :  { %v5629_v59 = vsel %vm2738_vm8, %v4809_v17, 0  ;;  %v4864_v43 = vadd.f32 %v4863_v7, %v4837_v16 }
 0x491   :  { %v5651_v36 = vand.u32 4294901760, %v5629_v59  ;;  %5535 = vmatmul.f32.vlgmr.msra.gmra.mxu0 %v5469_v53  ;;  %5570 = vmatmul.f32.gmra.mxu1 %v5478_v13 }
 0x492   :  { %v4888_v58 = vadd.f32 %v4887_v28, %v4864_v43  ;;  %5775 = vmatpush.msra.mxu0 %v5685_v49  ;;  %v5867_v49 = vsub.f32 %v5261_v26, %v5832_v29 }
 0x493   :  { %v5652_v8 = vsub.f32 %v5629_v59, %v5651_v36 }
 0x494   :  { %v4912_v37 = vadd.f32 %v4911_v47, %v4888_v58  ;;  %v5868_v34 = vand.u32 4294901760, %v5867_v49 }
 0x495   :  { %v5653_v41 = vand.u32 4294901760, %v5652_v8 }
 0x496   :  { %v5869_v63 = vsub.f32 %v5867_v49, %v5868_v34 }
 0x497   :  { %v4935_v35 = vpop.f32.mrf.mxu2  ;;  %5594 = vmatmul.f32.vlgmr.msra.gmra.mxu2 %v5468_v4  ;;  %5624 = vmatmul.f32.gmra.mxu3 %v5476_v27  ;;  %v5654_v19 = vsub.f32 %v5652_v8, %v5653_v41 }
 0x498   :  { %v4936_v20 = vadd.f32 %v4935_v35, %v4912_v37  ;;  %5833 = vmatpush.msra.mxu2 %v5832_v29  ;;  %v5870_v3 = vand.u32 4294901760, %v5869_v63 }
 0x499   :  { %5540 = vmatmul.f32.gmra.mxu0 %v5477_v21  ;;  %5690 = vmatmul.f32.vlgmr.msrb.gmra.mxu1 %v5651_v36  ;;  %v5655_v39 = vand.u32 4294901760, %v5654_v19 }
 0x49a   :  { %v4958_v14 = vadd.f32 %v4957_v31, %v4936_v20  ;;  %5926 = vmatpush.msrb.mxu1 %v5832_v29  ;;  %5871 = vmatpush.msra.mxu3 %v5870_v3 }
 0x49c   :  { %v5632_v50 = vsel %vm2738_vm8, %v4958_v14, 0 }
 0x49d   :  { %v5659_v60 = vand.u32 4294901760, %v5632_v50 }
 0x49f   :  { %v5660_v1 = vsub.f32 %v5632_v50, %v5659_v60  ;;  %5598 = vmatmul.f32.gmra.mxu2 %v5476_v27  ;;  %5747 = vmatmul.f32.vlgmr.msrb.gmra.mxu3 %v5653_v41 }
 0x4a0   :  { %5984 = vmatpush.msrb.mxu3 %v5832_v29 }
 0x4a1   :  { %5656 = vmatmul.f32.vlgmr.msrb.gmra.mxu0 %v5655_v39  ;;  %5694 = vmatmul.f32.gmra.mxu1 %v5659_v60  ;;  %v5661_v22 = vand.u32 4294901760, %v5660_v1 }
 0x4a2   :  { %5898 = vmatpush.msrb.mxu0 %v5867_v49 }
 0x4a3   :  { %v5662_v62 = vsub.f32 %v5660_v1, %v5661_v22 }
 0x4a5   :  { %v5663_v55 = vand.u32 4294901760, %v5662_v62 }
 0x4a7   :  { %5718 = vmatmul.f32.vlgmr.msrb.gmra.mxu2 %v5652_v8  ;;  %5753 = vmatmul.f32.gmra.mxu3 %v5661_v22 }
 0x4a8   :  { %5958 = vmatpush.msrb.mxu2 %v5868_v34 }
 0x4a9   :  { %5664 = vmatmul.f32.gmra.mxu0 %v5663_v55  ;;  %5803 = vmatmul.f32.vlgmr.msra.gmra.mxu1 %v5651_v36 }
 0x4af   :  { %5723 = vmatmul.f32.gmra.mxu2 %v5660_v1 }
 0x4b1   :  { %5777 = vmatmul.f32.vlgmr.msra.gmra.mxu0 %v5651_v36  ;;  %5807 = vmatmul.f32.gmra.mxu1 %v5659_v60 }
 0x4b9   :  { %5781 = vmatmul.f32.gmra.mxu0 %v5659_v60 }
 0x4ce   :  { %v5012_v12 = vpop.f32.mrf.mxu1 }
 0x4d6   :  { %v4986_v61 = vpop.f32.mrf.mxu0  ;;  %v5106_v24 = vpop.f32.mrf.mxu1 }
 0x4d7   :  { %v5013_v38 = vadd.f32 %v5012_v12, %v4986_v61  ;;  %v5036_v46 = vpop.f32.mrf.mxu2 }
 0x4d8   :  { %v5060_v30 = vpop.f32.mrf.mxu3 }
 0x4d9   :  { %v5037_v45 = vadd.f32 %v5036_v46, %v5013_v38 }
 0x4db   :  { %v5061_v4 = vadd.f32 %v5060_v30, %v5037_v45 }
 0x4de   :  { %v5084_v25 = vpop.f32.mrf.mxu0  ;;  %v5209_v54 = vpop.f32.mrf.mxu1 }
 0x4df   :  { %v5085_v53 = vadd.f32 %v5084_v25, %v5061_v4 }
 0x4e0   :  { %v5161_v18 = vpop.f32.mrf.mxu3 }
 0x4e1   :  { %v5107_v15 = vadd.f32 %v5106_v24, %v5085_v53 }
 0x4e3   :  { %v5812_v2 = vsel %vm2738_vm8, %v5107_v15, 0 }
 0x4e4   :  { %v5834_v40 = vand.u32 4294901760, %v5812_v2 }
 0x4e6   :  { %v5835_v52 = vsub.f32 %v5812_v2, %v5834_v40  ;;  %v5185_v10 = vpop.f32.mrf.mxu0  ;;  %5873 = vmatmul.f32.vlgmr.msra.gmra.mxu3 %v5834_v40  ;;  %v5135_v32 = vpop.f32.mrf.mxu2 }
 0x4e7   :  { %v5162_v23 = vadd.f32 %v5161_v18, %v5135_v32  ;;  %v5325_v11 = vpop.f32.mrf.mxu1 }
 0x4e8   :  { %v5836_v0 = vand.u32 4294901760, %v5835_v52  ;;  %5901 = vmatmul.f32.vlgmr.msrb.gmra.mxu0 %v5835_v52  ;;  %v5255_v51 = vpop.f32.mrf.mxu3 }
 0x4e9   :  { %v5186_v27 = vadd.f32 %v5185_v10, %v5162_v23 }
 0x4ea   :  { %v5837_v33 = vsub.f32 %v5835_v52, %v5836_v0  ;;  %5930 = vmatmul.f32.vlgmr.msrb.gmra.mxu1 %v5836_v0 }
 0x4eb   :  { %v5210_v5 = vadd.f32 %v5209_v54, %v5186_v27 }
 0x4ec   :  { %v5838_v21 = vand.u32 4294901760, %v5837_v33 }
 0x4ee   :  { %v5291_v48 = vpop.f32.mrf.mxu0  ;;  %5839 = vmatmul.f32.vlgmr.msra.gmra.mxu2 %v5838_v21  ;;  %v5233_v6 = vpop.f32.mrf.mxu2 }
 0x4ef   :  { %v5326_v13 = vadd.f32 %v5325_v11, %v5291_v48  ;;  %v5234_v44 = vadd.f32 %v5233_v6, %v5210_v5  ;;  %v5329_v9 = vpop.f32.mrf.mxu1 }
 0x4f0   :  { %v5382_v17 = vpop.f32.mrf.mxu3 }
 0x4f1   :  { %v5256_v42 = vadd.f32 %v5255_v51, %v5234_v44 }
 0x4f3   :  { %v5815_v56 = vsel %vm2738_vm8, %v5256_v42, 0 }
 0x4f4   :  { %v5842_v57 = vand.u32 4294901760, %v5815_v56 }
 0x4f6   :  { %v5299_v7 = vpop.f32.mrf.mxu0  ;;  %v5353_v16 = vpop.f32.mrf.mxu2  ;;  %5877 = vmatmul.f32.gmra.mxu3 %v5842_v57  ;;  %v5843_v59 = vsub.f32 %v5815_v56, %v5842_v57 }
 0x4f7   :  { %v5330_v43 = vadd.f32 %v5329_v9, %v5299_v7  ;;  %v5354_v36 = vadd.f32 %v5353_v16, %v5326_v13  ;;  %v5438_v37 = vpop.f32.mrf.mxu1 }
 0x4f8   :  { %5906 = vmatmul.f32.gmra.mxu0 %v5843_v59  ;;  %v5844_v28 = vand.u32 4294901760, %v5843_v59  ;;  %v5388_v14 = vpop.f32.mrf.mxu3 }
 0x4f9   :  { %v5383_v58 = vadd.f32 %v5382_v17, %v5354_v36 }
 0x4fa   :  { %5936 = vmatmul.f32.gmra.mxu1 %v5844_v28  ;;  %v5845_v8 = vsub.f32 %v5843_v59, %v5844_v28 }
 0x4fc   :  { %v5846_v47 = vand.u32 4294901760, %v5845_v8 }
 0x4fe   :  { %v5412_v35 = vpop.f32.mrf.mxu0  ;;  %v5358_v41 = vpop.f32.mrf.mxu2  ;;  %5847 = vmatmul.f32.gmra.mxu2 %v5846_v47  ;;  %5986 = vmatmul.f32.vlgmr.msrb.gmra.mxu3 %v5834_v40 }
 0x4ff   :  { %v5413_v20 = vadd.f32 %v5412_v35, %v5383_v58  ;;  %v5359_v31 = vadd.f32 %v5358_v41, %v5330_v43  ;;  %v5442_v39 = vpop.f32.mrf.mxu1 }
 0x500   :  { %v5508_v62 = vpop.f32.mrf.mxu3 }
 0x501   :  { %v5439_v19 = vadd.f32 %v5438_v37, %v5413_v20  ;;  %v5389_v50 = vadd.f32 %v5388_v14, %v5359_v31 }
 0x506   :  { %v5416_v60 = vpop.f32.mrf.mxu0  ;;  %5960 = vmatmul.f32.vlgmr.msrb.gmra.mxu2 %v5834_v40  ;;  %5990 = vmatmul.f32.gmra.mxu3 %v5842_v57  ;;  %v5474_v55 = vpop.f32.mrf.mxu2 }
 0x507   :  { %v5417_v1 = vadd.f32 %v5416_v60, %v5389_v50  ;;  %v5565_v34 = vpop.f32.mrf.mxu1  ;;  %v5509_v10 = vadd.f32 %v5508_v62, %v5474_v55 }
 0x509   :  { %v7617_v22 = vadd.f32 %v5442_v39, %v5417_v1 }
 0x50a   :  { %v5512_v26 = vpop.f32.mrf.mxu3 }
 0x50e   :  { %5964 = vmatmul.f32.gmra.mxu2 %v5842_v57  ;;  %v5536_v29 = vpop.f32.mrf.mxu0 }
 0x50f   :  { %v5571_v61 = vpop.f32.mrf.mxu1  ;;  %v5537_v0 = vadd.f32 %v5536_v29, %v5509_v10 }
 0x511   :  { %v5566_v21 = vadd.f32 %v5565_v34, %v5537_v0 }
 0x512   :  { %v5482_v49 = vpop.f32.mrf.mxu2  ;;  %v5621_v63 = vpop.f32.mrf.mxu3 }
 0x513   :  { %v5513_v27 = vadd.f32 %v5512_v26, %v5482_v49 }
 0x516   :  { %v5541_v3 = vpop.f32.mrf.mxu0 }
 0x517   :  { %v5691_v30 = vpop.f32.mrf.mxu1  ;;  %v5542_v42 = vadd.f32 %v5541_v3, %v5513_v27 }
 0x519   :  { %v5572_v16 = vadd.f32 %v5571_v61, %v5542_v42 }
 0x51a   :  { %v5595_v12 = vpop.f32.mrf.mxu2  ;;  %v5625_v38 = vpop.f32.mrf.mxu3 }
 0x51b   :  { %v5596_v13 = vadd.f32 %v5595_v12, %v5566_v21 }
 0x51d   :  { %v5622_v7 = vadd.f32 %v5621_v63, %v5596_v13 }
 0x51e   :  { %v5657_v24 = vpop.f32.mrf.mxu0 }
 0x51f   :  { %v5695_v53 = vpop.f32.mrf.mxu1  ;;  %v5692_v32 = vadd.f32 %v5691_v30, %v5657_v24  ;;  %v5994_v37 = vadd.f32 %v5622_v7, %v5439_v19 }
 0x522   :  { %v5599_v46 = vpop.f32.mrf.mxu2  ;;  %v5748_v45 = vpop.f32.mrf.mxu3 }
 0x523   :  { %v5600_v35 = vadd.f32 %v5599_v46, %v5572_v16 }
 0x525   :  { %v5626_v1 = vadd.f32 %v5625_v38, %v5600_v35 }
 0x526   :  { %v5665_v4 = vpop.f32.mrf.mxu0 }
 0x527   :  { %v5804_v2 = vpop.f32.mrf.mxu1  ;;  %v5696_v44 = vadd.f32 %v5695_v53, %v5665_v4  ;;  %v5997_v49 = vadd.f32 %v5626_v1, %v7617_v22 }
 0x52a   :  { %v5719_v25 = vpop.f32.mrf.mxu2  ;;  %v5754_v54 = vpop.f32.mrf.mxu3 }
 0x52b   :  { %v5720_v11 = vadd.f32 %v5719_v25, %v5692_v32 }
 0x52d   :  { %v5749_v5 = vadd.f32 %v5748_v45, %v5720_v11 }
 0x52e   :  { %v5778_v15 = vpop.f32.mrf.mxu0 }
 0x52f   :  { %v5808_v33 = vpop.f32.mrf.mxu1  ;;  %v5779_v56 = vadd.f32 %v5778_v15, %v5749_v5 }
 0x531   :  { %v5805_v43 = vadd.f32 %v5804_v2, %v5779_v56 }
 0x532   :  { %v5724_v18 = vpop.f32.mrf.mxu2 }
 0x533   :  { %v5725_v57 = vadd.f32 %v5724_v18, %v5696_v44  ;;  %v5995_v31 = vadd.f32 %v5994_v37, %v5805_v43 }
 0x535   :  { %v5755_v36 = vadd.f32 %v5754_v54, %v5725_v57 }
 0x536   :  { %v5782_v23 = vpop.f32.mrf.mxu0 }
 0x537   :  { %v5783_v14 = vadd.f32 %v5782_v23, %v5755_v36 }
 0x539   :  { %v5809_v55 = vadd.f32 %v5808_v33, %v5783_v14 }
 0x53b   :  { %v5998_v63 = vadd.f32 %v5997_v49, %v5809_v55 }
 0x565   :  { %v5902_v9 = vpop.f32.mrf.mxu0 }
 0x567   :  { %v5931_v59 = vpop.f32.mrf.mxu1 }
 0x569   :  { %v5874_v40 = vpop.f32.mrf.mxu3 }
 0x571   :  { %v5840_v52 = vpop.f32.mrf.mxu2 }
 0x572   :  { %v5875_v48 = vadd.f32 %v5874_v40, %v5840_v52 }
 0x574   :  { %v5903_v17 = vadd.f32 %v5902_v9, %v5875_v48 }
 0x575   :  { %v5907_v20 = vpop.f32.mrf.mxu0 }
 0x576   :  { %v5932_v58 = vadd.f32 %v5931_v59, %v5903_v17 }
 0x577   :  { %v5937_v62 = vpop.f32.mrf.mxu1 }
 0x579   :  { %v5878_v51 = vpop.f32.mrf.mxu3 }
 0x581   :  { %v5848_v6 = vpop.f32.mrf.mxu2  ;;  %v5987_v8 = vpop.f32.mrf.mxu3 }
 0x582   :  { %v5879_v28 = vadd.f32 %v5878_v51, %v5848_v6 }
 0x584   :  { %v5908_v50 = vadd.f32 %v5907_v20, %v5879_v28 }
 0x586   :  { %v5938_v26 = vadd.f32 %v5937_v62, %v5908_v50 }
 0x589   :  { %v5961_v47 = vpop.f32.mrf.mxu2  ;;  %v5991_v34 = vpop.f32.mrf.mxu3 }
 0x58a   :  { %v5962_v41 = vadd.f32 %v5961_v47, %v5932_v58 }
 0x58c   :  { %v5988_v60 = vadd.f32 %v5987_v8, %v5962_v41 }
 0x58e   :  { %v5996_v39 = vadd.f32 %v5995_v31, %v5988_v60 }
 0x590   :  { %6000 = vst [vmem:[%s7633_s7] sm:$0xff] %v5996_v39 }
 0x591   :  { %v5965_v29 = vpop.f32.mrf.mxu2 }
 0x592   :  { %v5966_v19 = vadd.f32 %v5965_v29, %v5938_v26 }
 0x594   :  { %v5992_v3 = vadd.f32 %v5991_v34, %v5966_v19 }
 0x596   :  { %v5999_v12 = vadd.f32 %v5998_v63, %v5992_v3 }
 0x598   :  { %6001 = vst [vmem:[%s7633_s7 + $0x8] sm:$0xff] %v5999_v12 }

</bundles_post_ra>
